<compile_context>
chip_gen: v6e
topology: v6e:2x2x1
jax: 0.10.0
libtpu: 0.0.40
codegen_flags: <defaults>
</compile_context>

<pallas_src>
import functools
import math

import jax
import jax.numpy as jnp
import numpy as np
from jax.experimental import pallas as pl
from jax.experimental.pallas import tpu as pltpu

_PREC = jax.lax.Precision.HIGHEST
_VMEM = pltpu.MemorySpace.VMEM
_SMEM = pltpu.MemorySpace.SMEM
_LN10000 = float(math.log(10000.0))
_LN_EPS = 1e-5  # torch.nn.LayerNorm default eps


def _dot(a, b):
    return jnp.dot(a, b, precision=_PREC, preferred_element_type=jnp.float32)


# ---------------------------------------------------------------------------
# Kernel 1: fused TemporalDependencyModel (batched over all node rows)
#   out = relu(x @ Wa^T + ba) + relu(temporal_feat(t) @ Wt^T + bt)
# ---------------------------------------------------------------------------
def temporal_dependency_kernel(tvi_ref, x_ref, wa_ref, ba_ref, wts_ref, wtc_ref,
                               bt_ref, out_ref, *, num_bases):
    t = tvi_ref[0, 0]                                              # scalar from SMEM
    idx = jax.lax.broadcasted_iota(jnp.int32, (1, num_bases), 1).astype(jnp.float32)
    # Reciprocal divisors generated in-kernel (no div/sel inputs, multiply not divide).
    inv_sin = jnp.exp(-(2.0 * idx / num_bases) * _LN10000)         # 1/10000**(2i/N)
    inv_cos = jnp.exp(-(2.0 * idx + 1.0 / num_bases) * _LN10000)   # 1/10000**(2i + 1/N)
    s = jnp.sin(t * inv_sin)                                       # (1, Nb)
    c = jnp.cos(t * inv_cos)                                       # (1, Nb)
    temp = jnp.maximum(_dot(s, wts_ref[...]) + _dot(c, wtc_ref[...]) + bt_ref[...], 0.0)
    attr = jnp.maximum(_dot(x_ref[...], wa_ref[...]) + ba_ref[...], 0.0)  # (N, H)
    out_ref[...] = attr + temp                                     # (1,H) broadcast over rows


def temporal_dependency(kp, x, timestamp):
    n, e_in = x.shape
    h = kp["wa_t"].shape[1]
    nb = kp["num_bases"]
    tvi = jnp.asarray(timestamp, jnp.float32).reshape(1, 1)
    cost = pl.CostEstimate(
        flops=2 * n * e_in * h + 2 * (2 * nb) * h + 2 * n * h,
        transcendentals=4 * nb,
        bytes_accessed=4 * (n * e_in + e_in * h + 2 * n * h + 2 * nb * h + 2 * h),
    )
    return pl.pallas_call(
        functools.partial(temporal_dependency_kernel, num_bases=nb),
        out_shape=jax.ShapeDtypeStruct((n, h), jnp.float32),
        in_specs=[pl.BlockSpec(memory_space=_SMEM)]
        + [pl.BlockSpec(memory_space=_VMEM)] * 6,
        out_specs=pl.BlockSpec(memory_space=_VMEM),
        cost_estimate=cost,
    )(tvi, x, kp["wa_t"], kp["ba"], kp["wt_sin"], kp["wt_cos"], kp["bt"])


# ---------------------------------------------------------------------------
# Kernel 2: SpatialDependencyModel neighbour aggregation (dense masked matmuls)
#   combined[v] = mean_j(adj[v,j]*emb[j]) + mean_j(emb[v]-emb[j])   (j: neighbours)
# ---------------------------------------------------------------------------
def spatial_agg_kernel(a_ref, emb_ref, emb_sel_ref, out_ref):
    a = a_ref[...]                                   # (Mv, N) adjacency rows (>= 0)
    mask = (a > 0.0).astype(jnp.float32)
    cnt = jnp.sum(mask, axis=1, keepdims=True)       # (Mv, 1), >= 1 by host filtering
    weighted = _dot(a, emb_ref[...])                 # sum_j adj[v, j] * emb[j]
    nbr_sum = _dot(mask, emb_ref[...])               # sum_{j in N(v)} emb[j]
    # intra_agg + inter_agg == (weighted - nbr_sum)/cnt + emb[v]
    out_ref[...] = (weighted - nbr_sum) / cnt + emb_sel_ref[...]


# ---------------------------------------------------------------------------
# Kernel 3: TransformerBlock (sparse edge attention via one-hot gather/scatter
# matmuls) + LayerNorms + FFN, fused with the prediction MLP.
# ---------------------------------------------------------------------------
def spatial_transformer_mlp_kernel(
        x_ref, wqkv_ref, bqkv_ref, gsrc_ref, gtgt_ref, ssrc_ref,
        w1_ref, b1_ref, w2_ref, b2_ref,
        ln1w_ref, ln1b_ref, ln2w_ref, ln2b_ref,
        wm1_ref, bm1_ref, wm2_ref, bm2_ref,
        fused_ref, pred_ref, *, num_heads, head_dim):
    h = num_heads * head_dim
    x = x_ref[...]                                               # (Mv, H)
    qkv = _dot(x, wqkv_ref[...]) + bqkv_ref[...]                 # (Mv, 3H)
    q = qkv[:, 0:h]
    k = qkv[:, h:2 * h]
    v = qkv[:, 2 * h:3 * h]

    # Per-head lane-group matrices built from iota (no runtime inputs, no reshape):
    #   red[j, hh]   = 1 if lane j belongs to head hh   (sums a head's lanes)
    #   bcast[hh, j] = 1 if lane j belongs to head hh   (broadcasts a head scalar)
    lane = jax.lax.broadcasted_iota(jnp.int32, (h, num_heads), 0)
    head = jax.lax.broadcasted_iota(jnp.int32, (h, num_heads), 1)
    lo = head * head_dim
    red = ((lane >= lo) & (lane < lo + head_dim)).astype(jnp.float32)          # (H, nh)
    lane_t = jax.lax.broadcasted_iota(jnp.int32, (num_heads, h), 1)
    head_t = jax.lax.broadcasted_iota(jnp.int32, (num_heads, h), 0)
    lo_t = head_t * head_dim
    bcast = ((lane_t >= lo_t) & (lane_t < lo_t + head_dim)).astype(jnp.float32)  # (nh, H)

    # Edge gathers as one-hot matmuls: q[src], k[tgt], v[tgt].
    q_e = _dot(gsrc_ref[...], q)                                 # (E, H)
    k_e = _dot(gtgt_ref[...], k)                                 # (E, H)
    v_e = _dot(gtgt_ref[...], v)                                 # (E, H)

    scores = _dot(q_e * k_e, red) * (1.0 / math.sqrt(head_dim))  # (E, nh)
    # softmax over ALL edges (dim=0), per head -- as in the reference module
    m = jnp.max(scores, axis=0, keepdims=True)
    p = jnp.exp(scores - m)
    sm = p / jnp.sum(p, axis=0, keepdims=True)                   # (E, nh)

    w_node = _dot(ssrc_ref[...], sm)                             # scatter-add by src (Mv, nh)
    w_edge = _dot(gsrc_ref[...], w_node)                         # gather back       (E, nh)
    weighted_v = _dot(w_edge, bcast) * v_e                       # (E, H)
    attn = _dot(ssrc_ref[...], weighted_v)                       # scatter-add       (Mv, H)
    # TODO(synk): nn.Dropout(0.1) implemented as identity (inference semantics).

    h1 = x + attn
    mu1 = jnp.mean(h1, axis=1, keepdims=True)
    var1 = jnp.mean((h1 - mu1) ** 2, axis=1, keepdims=True)
    xn = (h1 - mu1) * jax.lax.rsqrt(var1 + _LN_EPS) * ln1w_ref[...] + ln1b_ref[...]

    f = jnp.maximum(_dot(xn, w1_ref[...]) + b1_ref[...], 0.0)
    f = _dot(f, w2_ref[...]) + b2_ref[...]
    h2 = xn + f
    mu2 = jnp.mean(h2, axis=1, keepdims=True)
    var2 = jnp.mean((h2 - mu2) ** 2, axis=1, keepdims=True)
    fused = (h2 - mu2) * jax.lax.rsqrt(var2 + _LN_EPS) * ln2w_ref[...] + ln2b_ref[...]
    fused_ref[...] = fused

    # Prediction MLP fused into the same call (avoids one more overhead-bound launch).
    ph = jnp.maximum(_dot(fused, wm1_ref[...]) + bm1_ref[...], 0.0)
    pred_ref[...] = _dot(ph, wm2_ref[...]) + bm2_ref[...]


# ---------------------------------------------------------------------------
# Full-model wrapper (mirrors TemporalSpatialModel.forward, inference path).
# ---------------------------------------------------------------------------
def temporal_spatial_forward(kp, adj, x, node_indices, timestamp, relations,
                             index_obtains, num_heads):
    """Returns (prediction, fused, None, valid_indices)."""
    del node_indices, relations  # unused by the original forward as well
    adj_np = np.asarray(adj)

    # --- TemporalDependencyModel (kernel 1, fused + batched) ---
    temporal_emb = temporal_dependency(kp, x, timestamp)          # (N, H)

    # --- SpatialDependencyModel aggregation ---
    # Host-side data-dependent filtering (Python control flow in the original).
    valid = [int(vi) for vi in index_obtains if np.any(adj_np[int(vi)] > 0)]
    # TODO(synk): the "no valid aggregations" fallback branch is not implemented
    # (never taken with the demo graph).
    assert valid, "no node in index_obtains has neighbours"
    mv = len(valid)
    h = temporal_emb.shape[1]
    a_sel = jnp.asarray(adj_np[valid], jnp.float32)               # (Mv, N)
    emb_sel = temporal_emb[jnp.asarray(valid, jnp.int32)]         # (Mv, H)
    fused0 = pl.pallas_call(
        spatial_agg_kernel,
        out_shape=jax.ShapeDtypeStruct((mv, h), jnp.float32),
        in_specs=[pl.BlockSpec(memory_space=_VMEM)] * 3,
        out_specs=pl.BlockSpec(memory_space=_VMEM),
    )(a_sel, temporal_emb, emb_sel)

    # --- TransformerBlock + prediction MLP (kernel 3) ---
    # Host-side static edge subsetting / index remapping -> one-hot operands.
    src, tgt = np.nonzero(adj_np)
    index_map = {v: i for i, v in enumerate(valid)}
    keep = [e for e in range(src.shape[0])
            if int(src[e]) in index_map and int(tgt[e]) in index_map]
    # TODO(synk): the num_edges == 0 (FFN-only) branch is not implemented
    # (never taken with the demo graph).
    assert keep, "no edges inside the selected node subset"
    src_m = np.array([index_map[int(src[e])] for e in keep], np.int32)
    tgt_m = np.array([index_map[int(tgt[e])] for e in keep], np.int32)
    eye = np.eye(mv, dtype=np.float32)
    g_src = jnp.asarray(eye[src_m])                               # (E, Mv) gather by src
    g_tgt = jnp.asarray(eye[tgt_m])                               # (E, Mv) gather by tgt
    s_src = jnp.asarray(eye[src_m].T)                             # (Mv, E) scatter-add by src

    head_dim = h // num_heads
    fused, pred = pl.pallas_call(
        functools.partial(spatial_transformer_mlp_kernel,
                          num_heads=num_heads, head_dim=head_dim),
        out_shape=(jax.ShapeDtypeStruct((mv, h), jnp.float32),
                   jax.ShapeDtypeStruct((mv, 1), jnp.float32)),
        in_specs=[pl.BlockSpec(memory_space=_VMEM)] * 18,
        out_specs=(pl.BlockSpec(memory_space=_VMEM),
                   pl.BlockSpec(memory_space=_VMEM)),
    )(fused0, kp["wqkv_t"], kp["bqkv"], g_src, g_tgt, s_src,
      kp["w1_t"], kp["b1"], kp["w2_t"], kp["b2"],
      kp["ln1w"], kp["ln1b"], kp["ln2w"], kp["ln2b"],
      kp["wm1_t"], kp["bm1"], kp["wm2_t"], kp["bm2"])
    return pred, fused[None], None, valid


# ---------------------------------------------------------------------------
# Parameters (torch layout) and one-time kernel-layout preparation.
# ---------------------------------------------------------------------------
def _linear_params(key, in_features, out_features):
    kw, kb = jax.random.split(key)
    bound = 1.0 / math.sqrt(in_features)
    w = jax.random.uniform(kw, (out_features, in_features), jnp.float32, -bound, bound)
    b = jax.random.uniform(kb, (out_features,), jnp.float32, -bound, bound)
    return w, b


def make_torch_layout_params(key, embedding_size, hidden_size, num_bases, mlp_hidden):
    ks = jax.random.split(key, 7)
    tp = {}
    tp["wa"], tp["ba"] = _linear_params(ks[0], embedding_size, hidden_size)
    tp["wt"], tp["bt"] = _linear_params(ks[1], 2 * num_bases, hidden_size)
    tp["wqkv"], tp["bqkv"] = _linear_params(ks[2], hidden_size, 3 * hidden_size)
    tp["w1"], tp["b1"] = _linear_params(ks[3], hidden_size, 4 * hidden_size)
    tp["w2"], tp["b2"] = _linear_params(ks[4], 4 * hidden_size, hidden_size)
    tp["wm1"], tp["bm1"] = _linear_params(ks[5], hidden_size, mlp_hidden)
    tp["wm2"], tp["bm2"] = _linear_params(ks[6], mlp_hidden, 1)
    tp["ln1w"] = jnp.ones((hidden_size,), jnp.float32)
    tp["ln1b"] = jnp.zeros((hidden_size,), jnp.float32)
    tp["ln2w"] = jnp.ones((hidden_size,), jnp.float32)
    tp["ln2b"] = jnp.zeros((hidden_size,), jnp.float32)
    return tp


def prepare_kernel_params(tp, num_bases):
    """One-time layout prep (transpose / de-interleave), OUTSIDE the per-call path."""
    kp = {"num_bases": num_bases}
    kp["wa_t"] = jnp.asarray(tp["wa"].T)                     # (E_in, H)
    kp["ba"] = tp["ba"].reshape(1, -1)
    # de-interleave the temporal Linear columns [sin0,cos0,sin1,...] -> sin | cos
    kp["wt_sin"] = jnp.asarray(tp["wt"][:, 0::2].T)          # (Nb, H)
    kp["wt_cos"] = jnp.asarray(tp["wt"][:, 1::2].T)          # (Nb, H)
    kp["bt"] = tp["bt"].reshape(1, -1)
    kp["wqkv_t"] = jnp.asarray(tp["wqkv"].T)                 # (H, 3H)
    kp["bqkv"] = tp["bqkv"].reshape(1, -1)
    kp["w1_t"] = jnp.asarray(tp["w1"].T)
    kp["b1"] = tp["b1"].reshape(1, -1)
    kp["w2_t"] = jnp.asarray(tp["w2"].T)
    kp["b2"] = tp["b2"].reshape(1, -1)
    kp["ln1w"] = tp["ln1w"].reshape(1, -1)
    kp["ln1b"] = tp["ln1b"].reshape(1, -1)
    kp["ln2w"] = tp["ln2w"].reshape(1, -1)
    kp["ln2b"] = tp["ln2b"].reshape(1, -1)
    kp["wm1_t"] = jnp.asarray(tp["wm1"].T)
    kp["bm1"] = tp["bm1"].reshape(1, -1)
    kp["wm2_t"] = jnp.asarray(tp["wm2"].T)                   # (mlp_hidden, 1)
    kp["bm2"] = tp["bm2"].reshape(1, 1)
    return kp


# ---------------------------------------------------------------------------
# Pure-JAX reference (mirrors the PyTorch forward) for correctness checking.
# ---------------------------------------------------------------------------
def reference_temporal(tp, x, timestamp, num_bases):
    attr = jax.nn.relu(_dot(x, tp["wa"].T) + tp["ba"])
    i = jnp.arange(num_bases, dtype=jnp.float32)
    t = jnp.float32(timestamp)
    sin_b = jnp.sin(t / 10000.0 ** (2.0 * i / num_bases))
    cos_b = jnp.cos(t / 10000.0 ** (2.0 * i + 1.0 / num_bases))   # torch precedence quirk
    bases = jnp.stack([sin_b, cos_b], axis=1).reshape(1, -1)
    temp = jax.nn.relu(_dot(bases, tp["wt"].T) + tp["bt"])
    return attr + temp


def _layer_norm(z, w, b):
    mu = jnp.mean(z, axis=-1, keepdims=True)
    var = jnp.mean((z - mu) ** 2, axis=-1, keepdims=True)
    return (z - mu) / jnp.sqrt(var + _LN_EPS) * w + b


def reference_forward(tp, adj, x, timestamp, index_obtains, num_heads, num_bases):
    adj_np = np.asarray(adj)
    emb = reference_temporal(tp, x, timestamp, num_bases)
    reps, valid = [], []
    for vi in index_obtains:
        nbrs = np.nonzero(adj_np[int(vi)] > 0)[0]
        if nbrs.size == 0:
            continue
        nbr_emb = emb[nbrs]
        w = jnp.asarray(adj_np[int(vi), nbrs], jnp.float32)
        intra = jnp.mean(w[:, None] * nbr_emb, axis=0)
        inter = jnp.mean(emb[int(vi)] - nbr_emb, axis=0)
        reps.append(intra + inter)
        valid.append(int(vi))
    fused = jnp.stack(reps)                                       # (Mv, H)
    mv, h = fused.shape
    hd = h // num_heads

    qkv = _dot(fused, tp["wqkv"].T) + tp["bqkv"]
    q, k, v = jnp.split(qkv, 3, axis=-1)
    q = q.reshape(mv, num_heads, hd)
    k = k.reshape(mv, num_heads, hd)
    v = v.reshape(mv, num_heads, hd)

    src, tgt = np.nonzero(adj_np)
    index_map = {vv: ii for ii, vv in enumerate(valid)}
    keep = [e for e in range(src.shape[0])
            if int(src[e]) in index_map and int(tgt[e]) in index_map]
    src_m = np.array([index_map[int(src[e])] for e in keep])
    tgt_m = np.array([index_map[int(tgt[e])] for e in keep])

    q_e, k_e, v_e = q[src_m], k[tgt_m], v[tgt_m]
    scores = (q_e * k_e).sum(-1) / math.sqrt(hd)                  # (E, nh)
    out_heads = []
    for hh in range(num_heads):
        sm = jax.nn.softmax(scores[:, hh], axis=0)
        w_node = jnp.zeros((mv,), jnp.float32).at[src_m].add(sm)
        w_edge = w_node[src_m]
        wv = w_edge[:, None] * v_e[:, hh, :]
        out_heads.append(jnp.zeros((mv, hd), jnp.float32).at[src_m].add(wv))
    out = jnp.concatenate(out_heads, axis=1)                      # (Mv, H)

    x1 = _layer_norm(fused + out, tp["ln1w"], tp["ln1b"])
    ffn = _dot(jax.nn.relu(_dot(x1, tp["w1"].T) + tp["b1"]), tp["w2"].T) + tp["b2"]
    fused_out = _layer_norm(x1 + ffn, tp["ln2w"], tp["ln2b"])
    pred = _dot(jax.nn.relu(_dot(fused_out, tp["wm1"].T) + tp["bm1"]),
                tp["wm2"].T) + tp["bm2"]
    return pred, fused_out[None], None, valid


if __name__ == "__main__":
    embedding_size = 64
    hidden_size = 128          # lane-dense outputs (feedback: last dim = 128)
    num_temporal_bases = 8
    num_heads = 4
    mlp_hidden_size = 128
    num_nodes = 128            # node batch for the fused temporal kernel

    root = jax.random.PRNGKey(0)
    k_params, k_adj, k_x, k_t = jax.random.split(root, 4)

    tp = make_torch_layout_params(k_params, embedding_size, hidden_size,
                                  num_temporal_bases, mlp_hidden_size)
    kp = prepare_kernel_params(tp, num_temporal_bases)

    # Deterministic sparse weighted adjacency (+ a ring over the query nodes so
    # every query node has neighbours and the selected subgraph has edges).
    u = np.asarray(jax.random.uniform(k_adj, (num_nodes, num_nodes), jnp.float32))
    adj_np = np.where(u > 0.85, u, 0.0).astype(np.float32)
    np.fill_diagonal(adj_np, 0.0)
    index_obtains = list(range(0, num_nodes, 8))                  # 16 query nodes
    for j, vi in enumerate(index_obtains):
        adj_np[vi, index_obtains[(j + 1) % len(index_obtains)]] = 0.9
    adj = jnp.asarray(adj_np)

    x = jax.random.normal(k_x, (num_nodes, embedding_size), jnp.float32)
    timestamp = float(jax.random.uniform(k_t, (), jnp.float32, 0.0, 100.0))

    pred, fused, _, valid = temporal_spatial_forward(
        kp, adj, x, None, timestamp, None, index_obtains, num_heads=num_heads)
    pred = jax.block_until_ready(pred)
    fused = jax.block_until_ready(fused)

    # --- correctness vs. a pure-JAX mirror of the PyTorch forward ---
    temporal_emb = jax.block_until_ready(temporal_dependency(kp, x, timestamp))
    temporal_ref = reference_temporal(tp, x, timestamp, num_temporal_bases)
    pred_ref, fused_ref, _, valid_ref = reference_forward(
        tp, adj, x, timestamp, index_obtains, num_heads, num_temporal_bases)

    assert valid == valid_ref
    assert pred.shape == (len(valid), 1)
    assert fused.shape == (1, len(valid), hidden_size)
    np.testing.assert_allclose(np.asarray(temporal_emb), np.asarray(temporal_ref),
                               rtol=2e-3, atol=2e-3)
    np.testing.assert_allclose(np.asarray(fused), np.asarray(fused_ref),
                               rtol=2e-3, atol=2e-3)
    np.testing.assert_allclose(np.asarray(pred), np.asarray(pred_ref),
                               rtol=2e-3, atol=2e-3)
    print("KERNEL_OK")
</pallas_src>

<mosaic_0001>
module attributes {stable_mosaic.version = 11 : i64} {
  func.func @temporal_dependency_kernel(%arg0: memref<1x1xf32, #tpu.memory_space<smem>>, %arg1: memref<128x64xf32, #tpu.memory_space<vmem>>, %arg2: memref<64x128xf32, #tpu.memory_space<vmem>>, %arg3: memref<1x128xf32, #tpu.memory_space<vmem>>, %arg4: memref<8x128xf32, #tpu.memory_space<vmem>>, %arg5: memref<8x128xf32, #tpu.memory_space<vmem>>, %arg6: memref<1x128xf32, #tpu.memory_space<vmem>>, %arg7: memref<128x128xf32, #tpu.memory_space<vmem>>) attributes {dimension_semantics = [], scalar_prefetch = 0 : i64, scratch_operands = 0 : i64, tpu.core_type = #tpu.core_type<tc>} {
    %c0 = arith.constant 0 : index
    %c0_0 = arith.constant 0 : index
    %0 = memref.load %arg0[%c0, %c0_0] : memref<1x1xf32, #tpu.memory_space<smem>>
    %1 = tpu.iota {dimensions = array<i32: 1>} : vector<1x8xi32>
    %2 = arith.sitofp %1 : vector<1x8xi32> to vector<1x8xf32>
    %cst = arith.constant 2.000000e+00 : f32
    %3 = vector.broadcast %cst : f32 to vector<1x8xf32>
    %4 = arith.mulf %3, %2 : vector<1x8xf32>
    %cst_1 = arith.constant 8.000000e+00 : f32
    %5 = vector.broadcast %cst_1 : f32 to vector<1x8xf32>
    %6 = arith.divf %4, %5 : vector<1x8xf32>
    %cst_2 = arith.constant 0.000000e+00 : f32
    %7 = vector.broadcast %cst_2 : f32 to vector<1x8xf32>
    %8 = arith.subf %7, %6 : vector<1x8xf32>
    %cst_3 = arith.constant 9.21034049 : f32
    %9 = vector.broadcast %cst_3 : f32 to vector<1x8xf32>
    %10 = arith.mulf %8, %9 : vector<1x8xf32>
    %11 = math.exp %10 : vector<1x8xf32>
    %cst_4 = arith.constant 2.000000e+00 : f32
    %12 = vector.broadcast %cst_4 : f32 to vector<1x8xf32>
    %13 = arith.mulf %12, %2 : vector<1x8xf32>
    %cst_5 = arith.constant 1.250000e-01 : f32
    %14 = vector.broadcast %cst_5 : f32 to vector<1x8xf32>
    %15 = arith.addf %13, %14 : vector<1x8xf32>
    %cst_6 = arith.constant 0.000000e+00 : f32
    %16 = vector.broadcast %cst_6 : f32 to vector<1x8xf32>
    %17 = arith.subf %16, %15 : vector<1x8xf32>
    %cst_7 = arith.constant 9.21034049 : f32
    %18 = vector.broadcast %cst_7 : f32 to vector<1x8xf32>
    %19 = arith.mulf %17, %18 : vector<1x8xf32>
    %20 = math.exp %19 : vector<1x8xf32>
    %21 = vector.broadcast %0 : f32 to vector<1x8xf32>
    %22 = arith.mulf %21, %11 : vector<1x8xf32>
    %23 = math.sin %22 : vector<1x8xf32>
    %24 = vector.broadcast %0 : f32 to vector<1x8xf32>
    %25 = arith.mulf %24, %20 : vector<1x8xf32>
    %26 = math.cos %25 : vector<1x8xf32>
    %c0_8 = arith.constant 0 : index
    %c0_9 = arith.constant 0 : index
    %27 = vector.load %arg4[%c0_8, %c0_9] : memref<8x128xf32, #tpu.memory_space<vmem>>, vector<8x128xf32>
    %cst_10 = arith.constant dense<0.000000e+00> : vector<1x128xf32>
    %28 = tpu.matmul %23, %27, %cst_10 {dimension_numbers = #tpu.dot_dimension_numbers<[1], [0], [0], [1], [0, 0, 1, 1], [], []>, precision = #tpu.contract_precision<fp32>} : vector<1x8xf32>, vector<8x128xf32>, vector<1x128xf32> -> vector<1x128xf32>
    %c0_11 = arith.constant 0 : index
    %c0_12 = arith.constant 0 : index
    %29 = vector.load %arg5[%c0_11, %c0_12] : memref<8x128xf32, #tpu.memory_space<vmem>>, vector<8x128xf32>
    %cst_13 = arith.constant dense<0.000000e+00> : vector<1x128xf32>
    %30 = tpu.matmul %26, %29, %cst_13 {dimension_numbers = #tpu.dot_dimension_numbers<[1], [0], [0], [1], [0, 0, 1, 1], [], []>, precision = #tpu.contract_precision<fp32>} : vector<1x8xf32>, vector<8x128xf32>, vector<1x128xf32> -> vector<1x128xf32>
    %31 = arith.addf %28, %30 : vector<1x128xf32>
    %c0_14 = arith.constant 0 : index
    %c0_15 = arith.constant 0 : index
    %32 = vector.load %arg6[%c0_14, %c0_15] : memref<1x128xf32, #tpu.memory_space<vmem>>, vector<1x128xf32>
    %33 = arith.addf %31, %32 : vector<1x128xf32>
    %cst_16 = arith.constant 0.000000e+00 : f32
    %34 = vector.broadcast %cst_16 : f32 to vector<1x128xf32>
    %35 = arith.maximumf %33, %34 : vector<1x128xf32>
    %c0_17 = arith.constant 0 : index
    %c0_18 = arith.constant 0 : index
    %36 = vector.load %arg1[%c0_17, %c0_18] : memref<128x64xf32, #tpu.memory_space<vmem>>, vector<128x64xf32>
    %c0_19 = arith.constant 0 : index
    %c0_20 = arith.constant 0 : index
    %37 = vector.load %arg2[%c0_19, %c0_20] : memref<64x128xf32, #tpu.memory_space<vmem>>, vector<64x128xf32>
    %cst_21 = arith.constant dense<0.000000e+00> : vector<128x128xf32>
    %38 = tpu.matmul %36, %37, %cst_21 {dimension_numbers = #tpu.dot_dimension_numbers<[1], [0], [0], [1], [0, 0, 1, 1], [], []>, precision = #tpu.contract_precision<fp32>} : vector<128x64xf32>, vector<64x128xf32>, vector<128x128xf32> -> vector<128x128xf32>
    %c0_22 = arith.constant 0 : index
    %c0_23 = arith.constant 0 : index
    %39 = vector.load %arg3[%c0_22, %c0_23] : memref<1x128xf32, #tpu.memory_space<vmem>>, vector<1x128xf32>
    %40 = vector.broadcast %39 : vector<1x128xf32> to vector<128x128xf32>
    %41 = arith.addf %38, %40 : vector<128x128xf32>
    %cst_24 = arith.constant 0.000000e+00 : f32
    %42 = vector.broadcast %cst_24 : f32 to vector<128x128xf32>
    %43 = arith.maximumf %41, %42 : vector<128x128xf32>
    %44 = vector.broadcast %35 : vector<1x128xf32> to vector<128x128xf32>
    %45 = arith.addf %43, %44 : vector<128x128xf32>
    %c0_25 = arith.constant 0 : index
    %c0_26 = arith.constant 0 : index
    %46 = vector.load %arg7[%c0_25, %c0_26] : memref<128x128xf32, #tpu.memory_space<vmem>>, vector<128x128xf32>
    tpu.vector_store %arg7[%c0_25, %c0_26], %45 {strides = array<i32>} : memref<128x128xf32, #tpu.memory_space<vmem>>, vector<128x128xf32>,
    return
  }
}

</mosaic_0001>

<bundles_post_ra>
// kernel: tpu_custom_call.1
= control target key start
LH: loop header
LB: loop body
LE: loop exit
PB: predicated region body
PF: predicated region fallthrough
CT: control target
= control target key end

     0   :  { %v3931_v1 = vlaneseq  ;;  %s3923_s0 = inlined_call_operand.<no memory space> [shape: f32[1,1], index: 0, kind: input, shape index: {}]   ;;  %s3924_s1 = inlined_call_operand.vmem [shape: f32[128,64], index: 1, kind: input, shape index: {}]   ;;  %s3925_s2 = inlined_call_operand.vmem [shape: f32[64,128], index: 2, kind: input, shape index: {}]   ;;  %s3926_s3 = inlined_call_operand.vmem [shape: f32[1,128], index: 3, kind: input, shape index: {}]   ;;  %s3927_s4 = inlined_call_operand.vmem [shape: f32[8,128], index: 4, kind: input, shape index: {}]   ;;  %s3928_s5 = inlined_call_operand.vmem [shape: f32[8,128], index: 5, kind: input, shape index: {}]   ;;  %s3929_s6 = inlined_call_operand.vmem [shape: f32[1,128], index: 6, kind: input, shape index: {}]   ;;  %s3930_s7 = inlined_call_operand.hbm [shape: f32[128,128], index: 7, kind: output, shape index: {}]  }
   0x1   :  { %v255_v0 = vld [vmem:[%s3928_s5] sm:$0xff] }
   0x2   :  { %13 = vsyncpa [#allocation4], 0  ;;  %v3018_v2 = vmov 0.0   ;;  %v3074_v3 = vand.u32 4294901760, %v255_v0  ;;  %vm3019_vm0 = vmmov 0   ;;  %v30_v4 = vand.u32 127, %v3931_v1 }
   0x3   :  { %2665 = vmatprep.subr.mxu0 %v3018_v2  ;;  %2670 = vmatprep.subr.mxu1 %v3018_v2  ;;  %v44_v19 = vstv %s3923_s0  ;;  %v3020_v46 = vmov 683565275   ;;  %v3021_v48 = vmov 2475754826   ;;  %v3022_v50 = vmov 2131351028  }
   0x4   :  { %2667 = vmatprep.mubr.msk.f32.mxu0 %vm3019_vm0, %v3018_v2  ;;  %2672 = vmatprep.mubr.msk.f32.mxu1 %vm3019_vm0, %v3018_v2  ;;  %v3083_v5 = vsub.f32 %v255_v0, %v3074_v3  ;;  %v31_v6 = vcvt.s32.f32 %v30_v4  ;;  %v3023_v52 = vmov 2102212464   ;;  %v3024_v54 = vmov 920167782  }
   0x5   :  { %2666 = vmatpush3.msra.mxu0 %v3074_v3  ;;  %v3025_v62 = vmov 1326507024  }
   0x6   :  { %2675 = vmatprep.subr.mxu0 %v3018_v2  ;;  %v369_v7 = vand.u32 4294901760, %v3083_v5  ;;  %v32_v8 = vmul.f32 2.0, %v31_v6 }
   0x8   :  { %v370_v9 = vsub.f32 %v3083_v5, %v369_v7  ;;  %v34_v10 = vmul.f32 0.125, %v32_v8  ;;  %v39_v11 = vadd.f32 0.125, %v32_v8 }
   0xa   :  { %v371_v12 = vand.u32 4294901760, %v370_v9  ;;  %v35_v13 = vsub.f32 0.0, %v34_v10  ;;  %v40_v14 = vsub.f32 0.0, %v39_v11 }
   0xc   :  { %2671 = vmatpush3.msra.mxu1 %v371_v12  ;;  %v36_v15 = vmul.f32 9.2103405, %v35_v13  ;;  %v41_v16 = vmul.f32 9.2103405, %v40_v14 }
   0xd   :  { %2680 = vmatprep.subr.mxu1 %v3018_v2 }
   0xe   :  { %v37_v17 = vmul.f32 1.442695, %v36_v15  ;;  %v42_v18 = vmul.f32 1.442695, %v41_v16 }
  0x10   :  { %2984 = vpow2.f32 %v37_v17 }
  0x11   :  { %2986 = vpow2.f32 %v42_v18 }
  0x1d   :  { %v2985_v20 = vpop.eup %2984 }
  0x1e   :  { %v2987_v21 = vpop.eup %2986  ;;  %v3094_v22 = vmul.f32 %v2985_v20, %v44_v19 }
  0x1f   :  { %v3096_v23 = vmul.f32 %v2987_v21, %v44_v19 }
  0x20   :  { %v46_v24 = vand.u32 2147483647, %v3094_v22  ;;  %v49_v25 = vand.u32 2139095040, %v3094_v22  ;;  %vm48_vm15 = vcmp.lt.s32.totalorder %v3094_v22, 0 }
  0x21   :  { %v151_v26 = vand.u32 2147483647, %v3096_v23  ;;  %v154_v27 = vand.u32 2139095040, %v3096_v23 }
  0x22   :  { %v50_v28 = vshrl.u32 %v49_v25, 23  ;;  %v53_v29 = vand.u32 8388607, %v46_v24 }
  0x23   :  { %v155_v30 = vshrl.u32 %v154_v27, 23  ;;  %v158_v31 = vand.u32 8388607, %v151_v26 }
  0x24   :  { %v2488_v32 = vadd.s32 4294967169, %v50_v28  ;;  %v54_v35 = vor.u32 8388608, %v53_v29 }
  0x25   :  { %v2492_v33 = vadd.s32 4294967169, %v155_v30  ;;  %v159_v36 = vor.u32 8388608, %v158_v31 }
  0x26   :  { %v56_v34 = vadd.s32 1, %v2488_v32  ;;  %v3106_v42 = vshll.u32 %v54_v35, 8 }
  0x27   :  { %v161_v37 = vadd.s32 1, %v2492_v33  ;;  %v3108_v44 = vshll.u32 %v159_v36, 8 }
  0x28   :  { %vm57_vm1 = vcmp.gt.s32.totalorder %v56_v34, 0 }
  0x29   :  { %v58_v38 = vsel %vm57_vm1, %v56_v34, 0  ;;  %vm162_vm2 = vcmp.gt.s32.totalorder %v161_v37, 0  ;;  %vm3157_vm1 = vcmp.le.f32.partialorder %v46_v24, 0.7853982 }
  0x2a   :  { %v59_v39 = vshrl.u32 %v58_v38, 5  ;;  %v60_v40 = vand.u32 31, %v58_v38  ;;  %v163_v41 = vsel %vm162_vm2, %v161_v37, 0  ;;  %vm153_vm2 = vcmp.lt.s32.totalorder %v3096_v23, 0 }
  0x2b   :  { %v165_v43 = vand.u32 31, %v163_v41  ;;  %v3110_v56 = vshrl.u32 %v163_v41, 5 }
  0x2c   :  { %v61_v45 = vsub.s32 32, %v60_v40  ;;  %v63_v47 = vshll.u32 %v3020_v46, %v60_v40  ;;  %v66_v49 = vshll.u32 %v3021_v48, %v60_v40  ;;  %v69_v51 = vshll.u32 %v3022_v50, %v60_v40 }
  0x2d   :  { %v72_v53 = vshll.u32 %v3023_v52, %v60_v40  ;;  %v75_v55 = vshll.u32 %v3024_v54, %v60_v40  ;;  %vm78_vm3 = vcmp.lt.s32.totalorder %v59_v39, 1  ;;  %vm79_vm4 = vcmp.lt.s32.totalorder %v59_v39, 2 }
  0x2e   :  { %v62_v57 = vshrl.u32 %v3020_v46, %v61_v45  ;;  %v64_v58 = vshrl.u32 %v3021_v48, %v61_v45  ;;  %v67_v59 = vshrl.u32 %v3022_v50, %v61_v45  ;;  %v70_v60 = vshrl.u32 %v3023_v52, %v61_v45 }
  0x2f   :  { %v73_v61 = vshrl.u32 %v3024_v54, %v61_v45  ;;  %v76_v63 = vshrl.u32 %v3025_v62, %v61_v45  ;;  %vm81_vm5 = vcmp.lt.s32.totalorder %v59_v39, 4  ;;  %v166_v8 = vsub.s32 32, %v165_v43 }
  0x30   :  { %v65_v0 = vor.u32 %v64_v58, %v63_v47  ;;  %v68_v4 = vor.u32 %v67_v59, %v66_v49  ;;  %v71_v6 = vor.u32 %v70_v60, %v69_v51  ;;  %vm80_vm6 = vcmp.lt.s32.totalorder %v59_v39, 3 }
  0x31   :  { %v74_v9 = vor.u32 %v73_v61, %v72_v53  ;;  %v77_v10 = vor.u32 %v76_v63, %v75_v55  ;;  %v168_v11 = vshll.u32 %v3020_v46, %v165_v43  ;;  %v171_v19 = vshll.u32 %v3021_v48, %v165_v43 }
  0x32   :  { %v82_v12 = vsel %vm78_vm3, %v62_v57, %v65_v0  ;;  %v83_v13 = vsel %vm81_vm5, %v71_v6, 2102212464  ;;  %v86_v14 = vsel %vm78_vm3, %v65_v0, %v68_v4  ;;  %v90_v15 = vsel %vm78_vm3, %v68_v4, %v71_v6 }
  0x33   :  { %v84_v16 = vsel %vm80_vm6, %v68_v4, %v83_v13  ;;  %v87_v17 = vsel %vm81_vm5, %v74_v9, 920167782  ;;  %v91_v18 = vsel %vm81_vm5, %v77_v10, 1326507024  ;;  %v167_v25 = vshrl.u32 %v3020_v46, %v166_v8 }
  0x34   :  { %v88_v20 = vsel %vm80_vm6, %v71_v6, %v87_v17  ;;  %v92_v21 = vsel %vm80_vm6, %v74_v9, %v91_v18  ;;  %v169_v27 = vshrl.u32 %v3021_v48, %v166_v8  ;;  %v85_v28 = vsel %vm79_vm4, %v82_v12, %v84_v16 }
  0x35   :  { %v89_v29 = vsel %vm79_vm4, %v86_v14, %v88_v20  ;;  %v93_v30 = vsel %vm79_vm4, %v90_v15, %v92_v21  ;;  %v172_v31 = vshrl.u32 %v3022_v50, %v166_v8  ;;  %v174_v38 = vshll.u32 %v3022_v50, %v165_v43 }
  0x36   :  { %v3119_v32 = vmul.u32.u64.low %v3106_v42, %v93_v30  ;;  %v3120_v33 = vmul.u32.u64.high %v3106_v42, %v93_v30, %v3119_v32  ;;  %v3123_v34 = vmul.u32.u64.low %v3106_v42, %v89_v29  ;;  %v3124_v35 = vmul.u32.u64.high %v3106_v42, %v89_v29, %v3123_v34 }
  0x37   :  { %v170_v36 = vor.u32 %v169_v27, %v168_v11  ;;  %v173_v37 = vor.u32 %v172_v31, %v171_v19  ;;  %v175_v40 = vshrl.u32 %v3023_v52, %v166_v8  ;;  %v177_v41 = vshll.u32 %v3023_v52, %v165_v43 }
  0x38   :  { %v178_v45 = vshrl.u32 %v3024_v54, %v166_v8  ;;  %v180_v46 = vshll.u32 %v3024_v54, %v165_v43  ;;  %v181_v47 = vshrl.u32 %v3025_v62, %v166_v8  ;;  %v101_v39 = vmul.u32 %v3106_v42, %v85_v28 }
  0x39   :  { %v176_v48 = vor.u32 %v175_v40, %v174_v38  ;;  %vm183_vm7 = vcmp.lt.s32.totalorder %v3110_v56, 1  ;;  %vm184_vm8 = vcmp.lt.s32.totalorder %v3110_v56, 2  ;;  %vm103_vm9 = vc.u32 %v3120_v33, %v3123_v34 }
  0x3a   :  { %v104_v49 = vadd.s32 1, %v3124_v35  ;;  %v179_v51 = vor.u32 %v178_v45, %v177_v41  ;;  %vm185_vm10 = vcmp.lt.s32.totalorder %v3110_v56, 3  ;;  %v182_v50 = vor.u32 %v181_v47, %v180_v46 }
  0x3b   :  { %vm186_vm11 = vcmp.lt.s32.totalorder %v3110_v56, 4  ;;  %v187_v52 = vsel %vm183_vm7, %v167_v25, %v170_v36  ;;  %v191_v43 = vsel %vm183_vm7, %v170_v36, %v173_v37  ;;  %v195_v55 = vsel %vm183_vm7, %v173_v37, %v176_v48 }
  0x3c   :  { %v105_v53 = vsel %vm103_vm9, %v104_v49, %v3124_v35  ;;  %v188_v42 = vsel %vm186_vm11, %v176_v48, 2102212464  ;;  %v192_v54 = vsel %vm186_vm11, %v179_v51, 920167782  ;;  %v196_v60 = vsel %vm186_vm11, %v182_v50, 1326507024 }
  0x3d   :  { %v106_v57 = vadd.s32 %v105_v53, %v101_v39  ;;  %v189_v58 = vsel %vm185_vm10, %v173_v37, %v188_v42  ;;  %v193_v59 = vsel %vm185_vm10, %v176_v48, %v192_v54  ;;  %v197_v63 = vsel %vm185_vm10, %v179_v51, %v196_v60 }
  0x3e   :  { %v190_v61 = vsel %vm184_vm8, %v187_v52, %v189_v58  ;;  %v194_v62 = vsel %vm184_vm8, %v191_v43, %v193_v59  ;;  %v198_v4 = vsel %vm184_vm8, %v195_v55, %v197_v63  ;;  %v102_v29 = vadd.s32 %v3123_v34, %v3120_v33 }
  0x3f   :  { %v107_v0 = vadd.s32 536870912, %v106_v57  ;;  %v3141_v6 = vmul.u32.u64.low %v3108_v44, %v194_v62  ;;  %v3142_v8 = vmul.u32.u64.high %v3108_v44, %v194_v62, %v3141_v6  ;;  %v206_v12 = vmul.u32 %v3108_v44, %v190_v61 }
  0x40   :  { %v3145_v9 = vmul.u32.u64.low %v3108_v44, %v198_v4  ;;  %v3146_v10 = vmul.u32.u64.high %v3108_v44, %v198_v4, %v3145_v9  ;;  %vm3167_vm3 = vcmp.le.f32.partialorder %v151_v26, 0.7853982  ;;  %vm138_vm8 = vweird.f32 %v3094_v22 }
  0x41   :  { %v108_v11 = vshrl.u32 %v107_v0, 30  ;;  %v209_v14 = vadd.s32 1, %v3142_v8  ;;  %vm243_vm11 = vweird.f32 %v3096_v23 }
  0x42   :  { %vm208_vm12 = vc.u32 %v3146_v10, %v3141_v6  ;;  %v207_v48 = vadd.s32 %v3141_v6, %v3146_v10 }
  0x43   :  { %v109_v13 = vshll.u32 %v108_v11, 30  ;;  %v210_v56 = vsel %vm208_vm12, %v209_v14, %v3142_v8  ;;  %v132_v59 = vsub.s32 4, %v108_v11  ;;  %vm256_vm12 = vcmask 64512  }
  0x44   :  { %v211_v16 = vadd.s32 %v210_v56, %v206_v12 }
  0x45   :  { %v110_v15 = vsub.s32 %v106_v57, %v109_v13  ;;  %v133_v0 = vsel %vm48_vm15, %v132_v59, %v108_v11 }
  0x46   :  { %v212_v18 = vadd.s32 536870912, %v211_v16  ;;  %v135_v8 = vsel %vm3157_vm1, 0, %v133_v0  ;;  %v1158_v0 = vld [vmem:[%s3924_s1] sm:$0xff] }
  0x47   :  { %v112_v17 = vsub.s32 0, %v110_v15  ;;  %v139_v11 = vadd.s32 3, %v135_v8  ;;  %v1175_v8 = vld [vmem:[%s3925_s2 + $0x8] sm:$0xff] }
  0x48   :  { %v213_v20 = vshrl.u32 %v212_v18, 30 }
  0x49   :  { %v2489_v19 = vmin.u32 %v112_v17, %v110_v15 }
  0x4a   :  { %v214_v25 = vshll.u32 %v213_v20, 30  ;;  %v237_v10 = vsub.s32 4, %v213_v20 }
  0x4b   :  { %v114_v21 = vclz %v2489_v19  ;;  %v254_v19 = vld [vmem:[%s3927_s4] sm:$0xff] }
  0x4c   :  { %v215_v28 = vsub.s32 %v211_v16, %v214_v25  ;;  %v238_v13 = vsel %vm153_vm2, %v237_v10, %v213_v20  ;;  %v3181_v20 = vand.u32 4294901760, %v254_v19 }
  0x4d   :  { %v2490_v27 = vadd.s32 4294967294, %v114_v21  ;;  %v240_v56 = vsel %vm3167_vm3, 0, %v238_v13 }
  0x4e   :  { %v217_v30 = vsub.s32 0, %v215_v28  ;;  %v244_v18 = vand.u32 3, %v240_v56 }
  0x4f   :  { %vm2491_vm13 = vcmp.lt.s32.totalorder %v2490_v27, 0 }
  0x50   :  { %v117_v44 = vsel %vm2491_vm13, 0, %v2490_v27  ;;  %v2493_v36 = vmin.u32 %v217_v30, %v215_v28  ;;  %vm249_vm7 = vcmp.eq.s32.totalorder %v244_v18, 2  ;;  %vm246_vm9 = vcmp.eq.s32.totalorder %v244_v18, 0 }
  0x51   :  { %v118_v31 = vsub.s32 32, %v117_v44  ;;  %v119_v32 = vshll.u32 %v110_v15, %v117_v44  ;;  %v122_v35 = vsub.s32 4294967266, %v117_v44  ;;  %v140_v15 = vand.u32 3, %v139_v11 }
  0x52   :  { %v219_v40 = vclz %v2493_v36  ;;  %vm245_vm10 = vcmp.lt.s32.totalorder %v244_v18, 2  ;;  %v3186_v36 = vsub.f32 %v254_v19, %v3181_v20  ;;  %vm1189_vm13 = vcmask 523264   ;;  %v1159_v19 = vld [vmem:[%s3924_s1 + $0x8] sm:$0xff] }
  0x53   :  { %v120_v37 = vshrl.u32 %v102_v29, %v118_v31  ;;  %v123_v38 = vadd.s32 127, %v122_v35  ;;  %vm142_vm4 = vcmp.eq.s32.totalorder %v140_v15, 0  ;;  %vm145_vm5 = vcmp.eq.s32.totalorder %v140_v15, 2 }
  0x54   :  { %v2494_v46 = vadd.s32 4294967294, %v219_v40  ;;  %vm141_vm6 = vcmp.lt.s32.totalorder %v140_v15, 2  ;;  %v1191_v11 = vsel %vm1189_vm13, %v1158_v0, 0  ;;  %v3292_v15 = vand.u32 4294901760, %v1175_v8 }
  0x55   :  { %v121_v41 = vor.u32 %v120_v37, %v119_v32  ;;  %v124_v45 = vshll.u32 %v123_v38, 23  ;;  %v3308_v18 = vand.u32 4294901760, %v1191_v11 }
  0x56   :  { %vm2495_vm14 = vcmp.lt.s32.totalorder %v2494_v46, 0 }
  0x57   :  { %v125_v47 = vor.u32 4788187, %v124_v45  ;;  %v128_v39 = vcvt.s32.f32 %v121_v41  ;;  %v222_v33 = vsel %vm2495_vm14, 0, %v2494_v46  ;;  %v818_v46 = vand.u32 4294901760, %v3186_v36 }
  0x58   :  { %v223_v34 = vsub.s32 32, %v222_v33  ;;  %v224_v51 = vshll.u32 %v215_v28, %v222_v33  ;;  %v227_v50 = vsub.s32 4294967266, %v222_v33 }
  0x59   :  { %v126_v49 = vand.u32 2147483647, %v125_v47  ;;  %v819_v33 = vsub.f32 %v3186_v36, %v818_v46 }
  0x5a   :  { %v225_v43 = vshrl.u32 %v207_v48, %v223_v34  ;;  %v228_v53 = vadd.s32 127, %v227_v50  ;;  %v1180_v48 = vld [vmem:[%s3925_s2 + $0x30] sm:$0xff]  ;;  %v1179_v50 = vld [vmem:[%s3925_s2 + $0x28] sm:$0xff] }
  0x5b   :  { %v129_v52 = vmul.f32 %v128_v39, %v126_v49 }
  0x5c   :  { %v226_v55 = vor.u32 %v225_v43, %v224_v51  ;;  %v229_v57 = vshll.u32 %v228_v53, 23  ;;  %v3213_v51 = vand.u32 4294901760, %v1180_v48  ;;  %v1178_v53 = vld [vmem:[%s3925_s2 + $0x20] sm:$0xff] }
  0x5d   :  { %v130_v54 = vxor.u32 2147483648, %v129_v52 }
  0x5e   :  { %v230_v61 = vor.u32 4788187, %v229_v57  ;;  %v233_v62 = vcvt.s32.f32 %v226_v55  ;;  %v3228_v55 = vand.u32 4294901760, %v1179_v50 }
  0x5f   :  { %v131_v58 = vsel %vm48_vm15, %v130_v54, %v129_v52  ;;  %v820_v54 = vand.u32 4294901760, %v819_v33 }
  0x60   :  { %v134_v60 = vsel %vm3157_vm1, %v3094_v22, %v131_v58  ;;  %v231_v63 = vand.u32 2147483647, %v230_v61  ;;  %v1181_v22 = vld [vmem:[%s3925_s2 + $0x38] sm:$0xff]  ;;  %v3234_v58 = vsub.f32 %v1180_v48, %v3213_v51  ;;  %v1176_v61 = vld [vmem:[%s3925_s2 + $0x10] sm:$0xff]  ;;  %v1162_v48 = vld [vmem:[%s3924_s1 + $0x20] sm:$0xff] }
  0x61   :  { %2988 = vcosq.f32 %v134_v60 }
  0x62   :  { %2990 = vsinq.f32 %v134_v60  ;;  %v234_v4 = vmul.f32 %v233_v62, %v231_v63  ;;  %v3241_v60 = vand.u32 4294901760, %v1178_v53  ;;  %v3251_v62 = vsub.f32 %v1179_v50, %v3228_v55 }
  0x63   :  { %v3264_v24 = vand.u32 4294901760, %v3234_v58 }
  0x64   :  { %v235_v6 = vxor.u32 2147483648, %v234_v4  ;;  %v3274_v10 = vsub.f32 %v1178_v53, %v3241_v60  ;;  %v3287_v13 = vand.u32 4294901760, %v3251_v62  ;;  %v1163_v53 = vld [vmem:[%s3924_s1 + $0x28] sm:$0xff] }
  0x65   :  { %v1206_v0 = vsel %vm1189_vm13, %v1163_v53, 0 }
  0x66   :  { %v236_v9 = vsel %vm153_vm2, %v235_v6, %v234_v4  ;;  %v3266_v6 = vand.u32 4294901760, %v1176_v61 }
  0x67   :  { %v239_v12 = vsel %vm3167_vm3, %v3096_v23, %v236_v9  ;;  %v3194_v23 = vand.u32 4294901760, %v1181_v22 }
  0x68   :  { %2992 = vcosq.f32 %v239_v12 }
  0x69   :  { %2994 = vsinq.f32 %v239_v12  ;;  %v3211_v34 = vsub.f32 %v1181_v22, %v3194_v23  ;;  %v1174_v12 = vld [vmem:[%s3925_s2] sm:$0xff] }
  0x6a   :  { %v3302_v56 = vand.u32 4294901760, %v1174_v12 }
  0x6b   :  { %v3231_v57 = vand.u32 4294901760, %v3211_v34 }
  0x6d   :  { %v1491_v4 = vsub.f32 %v3211_v34, %v3231_v57 }
  0x6e   :  { %v2989_v14 = vpop.eup %2988 }
  0x6f   :  { %v2991_v26 = vpop.eup %2990  ;;  %v146_v17 = vxor.u32 2147483648, %v2989_v14 }
  0x70   :  { %v143_v16 = vxor.u32 2147483648, %v2991_v26 }
  0x71   :  { %v147_v25 = vsel %vm145_vm5, %v146_v17, %v2991_v26  ;;  %v3300_v26 = vsub.f32 %v1176_v61, %v3266_v6  ;;  %v3306_v17 = vand.u32 4294901760, %v3274_v10 }
  0x72   :  { %v144_v21 = vsel %vm142_vm4, %v2989_v14, %v143_v16 }
  0x73   :  { %v148_v29 = vsel %vm141_vm6, %v144_v21, %v147_v25  ;;  %v1505_v21 = vsub.f32 %v3251_v62, %v3287_v13 }
  0x74   :  { %v149_v32 = vsel %vm138_vm8, nan, %v148_v29  ;;  %v3329_v29 = vand.u32 4294901760, %v3300_v26 }
  0x75   :  { %v2993_v27 = vpop.eup %2992  ;;  %v707_v41 = vsel %vm256_vm12, %v149_v32, 0  ;;  %v1194_v32 = vsel %vm1189_vm13, %v1159_v19, 0 }
  0x76   :  { %v2995_v28 = vpop.eup %2994  ;;  %v250_v44 = vxor.u32 2147483648, %v2993_v27  ;;  %v3197_v39 = vand.u32 4294901760, %v707_v41 }
  0x77   :  { %v247_v30 = vxor.u32 2147483648, %v2995_v28 }
  0x78   :  { %v251_v31 = vsel %vm249_vm7, %v250_v44, %v2995_v28  ;;  %v3219_v43 = vsub.f32 %v707_v41, %v3197_v39  ;;  %v3332_v44 = vsub.f32 %v1174_v12, %v3302_v56  ;;  %v1526_v41 = vsub.f32 %v3300_v26, %v3329_v29  ;;  %v1165_v12 = vld [vmem:[%s3924_s1 + $0x38] sm:$0xff] }
  0x79   :  { %v248_v35 = vsel %vm246_vm9, %v2993_v27, %v247_v30  ;;  %v3324_v27 = vsub.f32 %v1175_v8, %v3292_v15  ;;  %v1512_v30 = vsub.f32 %v3274_v10, %v3306_v17 }
  0x7a   :  { %v252_v37 = vsel %vm245_vm10, %v248_v35, %v251_v31  ;;  %v777_v59 = vand.u32 4294901760, %v3219_v43  ;;  %v3341_v31 = vsub.f32 %v1191_v11, %v3308_v18  ;;  %v1506_v35 = vand.u32 4294901760, %v1505_v21  ;;  %v1166_v11 = vld [vmem:[%s3924_s1 + $0x40] sm:$0xff] }
  0x7b   :  { %v253_v38 = vsel %vm243_vm11, nan, %v252_v37 }
  0x7c   :  { %v258_v40 = vsel %vm256_vm12, %v253_v38, 0  ;;  %v778_v9 = vsub.f32 %v3219_v43, %v777_v59  ;;  %v3351_v38 = vand.u32 4294901760, %v3324_v27  ;;  %v3938_v33 = vand.u32 4294901760, %v3341_v31 }
  0x7d   :  { %v3191_v45 = vand.u32 4294901760, %v258_v40 }
  0x7e   :  { %v779_v16 = vand.u32 4294901760, %v778_v9 }
  0x7f   :  { %v327_v47 = vsub.f32 %v258_v40, %v3191_v45  ;;  %2673 = vmatmul.mubr.f32.vlgmr.msra.gmra.mxu1 %v3191_v45  ;;  %v1161_v40 = vld [vmem:[%s3924_s1 + $0x18] sm:$0xff] }
  0x80   :  { %2681 = vmatpush3.msra.mxu1 %v3074_v3  ;;  %2682 = vmatprep.mubr.msk.f32.mxu1 %vm3019_vm0, %v3018_v2 }
  0x81   :  { %v328_v49 = vand.u32 4294901760, %v327_v47  ;;  %2690 = vmatprep.subr.mxu1 %v3018_v2 }
  0x83   :  { %v329_v52 = vsub.f32 %v327_v47, %v328_v49  ;;  %2683 = vmatmul.mubr.f32.vlgmr.msra.gmra.mxu1 %v328_v49  ;;  %v1513_v49 = vand.u32 4294901760, %v1512_v30 }
  0x84   :  { %2691 = vmatpush3.msra.mxu1 %v3074_v3  ;;  %2692 = vmatprep.mubr.msk.f32.mxu1 %vm3019_vm0, %v3018_v2  ;;  %v1177_v3 = vld [vmem:[%s3925_s2 + $0x18] sm:$0xff] }
  0x85   :  { %v330_v42 = vand.u32 4294901760, %v329_v52  ;;  %2700 = vmatprep.subr.mxu1 %v3018_v2  ;;  %v3253_v63 = vand.u32 4294901760, %v1177_v3  ;;  %v1200_v52 = vsel %vm1189_vm13, %v1161_v40, 0 }
  0x86   :  { %v3396_v61 = vand.u32 4294901760, %v1200_v52 }
  0x87   :  { %2668 = vmatmul.mubr.f32.vlgmr.msra.gmra.mxu0 %v330_v42  ;;  %2693 = vmatmul.mubr.f32.vlgmr.msra.gmra.mxu1 %v3191_v45  ;;  %v3290_v14 = vsub.f32 %v1177_v3, %v3253_v63  ;;  %v1527_v42 = vand.u32 4294901760, %v1526_v41 }
  0x88   :  { %2676 = vmatpush3.msra.mxu0 %v3083_v5  ;;  %2677 = vmatprep.mubr.msk.f32.mxu0 %vm3019_vm0, %v3018_v2  ;;  %v1492_v5 = vand.u32 4294901760, %v1491_v4 }
  0x89   :  { %2685 = vmatprep.subr.mxu0 %v3018_v2  ;;  %2701 = vmatpush3.msra.mxu1 %v820_v54  ;;  %v3321_v25 = vand.u32 4294901760, %v3290_v14 }
  0x8a   :  { %2702 = vmatprep.mubr.msk.f32.mxu1 %vm3019_vm0, %v3018_v2  ;;  %2710 = vmatprep.subr.mxu1 %v3018_v2 }
  0x8b   :  { %2678 = vmatmul.mubr.f32.vlgmr.msra.gmra.mxu0 %v327_v47  ;;  %2703 = vmatmul.mubr.f32.vlgmr.msra.gmra.mxu1 %v3197_v39  ;;  %v1519_v37 = vsub.f32 %v3290_v14, %v3321_v25  ;;  %v3362_v47 = vand.u32 4294901760, %v1194_v32 }
  0x8c   :  { %2686 = vmatpush3.msra.mxu0 %v369_v7  ;;  %2687 = vmatprep.mubr.msk.f32.mxu0 %vm3019_vm0, %v3018_v2  ;;  %v1498_v7 = vsub.f32 %v3234_v58, %v3264_v24 }
  0x8d   :  { %2695 = vmatprep.subr.mxu0 %v3018_v2  ;;  %2711 = vmatpush3.msra.mxu1 %v3181_v20  ;;  %v3390_v3 = vsub.f32 %v1194_v32, %v3362_v47  ;;  %v1212_v32 = vsel %vm1189_vm13, %v1165_v12, 0 }
  0x8e   :  { %2712 = vmatprep.mubr.msk.f32.mxu1 %vm3019_vm0, %v3018_v2  ;;  %2720 = vmatprep.subr.mxu1 %v3018_v2  ;;  %v1499_v28 = vand.u32 4294901760, %v1498_v7  ;;  %v3415_v7 = vand.u32 4294901760, %v1206_v0 }
  0x8f   :  { %2688 = vmatmul.mubr.f32.vlgmr.msra.gmra.mxu0 %v3191_v45  ;;  %2713 = vmatmul.mubr.f32.vlgmr.msra.gmra.mxu1 %v777_v59  ;;  %v3360_v45 = vand.u32 4294901760, %v3332_v44  ;;  %v1314_v59 = vsub.f32 %v3341_v31, %v3938_v33  ;;  %v1173_v33 = vld [vmem:[%s3924_s1 + $0x78] sm:$0xff] }
  0x90   :  { %2696 = vmatpush3.msra.mxu0 %v3181_v20  ;;  %2697 = vmatprep.mubr.msk.f32.mxu0 %vm3019_vm0, %v3018_v2  ;;  %v3439_v40 = vsub.f32 %v1206_v0, %v3415_v7 }
  0x91   :  { %2705 = vmatprep.subr.mxu0 %v3018_v2  ;;  %2721 = vmatpush3.msra.mxu1 %v3181_v20  ;;  %v1160_v20 = vld [vmem:[%s3924_s1 + $0x10] sm:$0xff]  ;;  %v1540_v54 = vsub.f32 %v3332_v44, %v3360_v45  ;;  %v1315_v19 = vand.u32 4294901760, %v1314_v59 }
  0x92   :  { %2722 = vmatprep.mubr.msk.f32.mxu1 %vm3019_vm0, %v3018_v2  ;;  %2765 = vmatprep.subr.mxu1 %v1492_v5  ;;  %v1197_v22 = vsel %vm1189_vm13, %v1160_v20, 0 }
  0x93   :  { %2698 = vmatmul.mubr.f32.vlgmr.msra.gmra.mxu0 %v779_v16  ;;  %2723 = vmatmul.mubr.f32.vlgmr.msra.gmra.mxu1 %v3197_v39  ;;  %v3374_v50 = vand.u32 4294901760, %v1197_v22  ;;  %v1541_v21 = vand.u32 4294901760, %v1540_v54  ;;  %v3935_v54 = vand.u32 4294901760, %v3439_v40 }
  0x94   :  { %2706 = vmatpush3.msra.mxu0 %v3186_v36  ;;  %2707 = vmatprep.mubr.msk.f32.mxu0 %vm3019_vm0, %v3018_v2  ;;  %v1520_v36 = vand.u32 4294901760, %v1519_v37  ;;  %v1167_v37 = vld [vmem:[%s3924_s1 + $0x48] sm:$0xff] }
  0x95   :  { %2715 = vmatprep.subr.mxu0 %v3018_v2  ;;  %2766 = vmatpush3.msra.mxu1 %v1492_v5  ;;  %v3402_v8 = vsub.f32 %v1197_v22, %v3374_v50  ;;  %v3937_v5 = vand.u32 4294901760, %v3390_v3 }
  0x96   :  { %2767 = vmatprep.subr.mxu1 %v1499_v28  ;;  %2781 = vmatprep.mubr.f32.mxu1 %v3308_v18 }
  0x97   :  { %2708 = vmatmul.mubr.f32.vlgmr.msra.gmra.mxu0 %v3219_v43  ;;  %2768 = vmatpush3.msra.mxu1 %v1499_v28  ;;  %v1164_v43 = vld [vmem:[%s3924_s1 + $0x30] sm:$0xff]  ;;  %v3421_v28 = vsub.f32 %v1200_v52, %v3396_v61  ;;  %v3934_v20 = vand.u32 4294901760, %v3402_v8  ;;  %v1324_v22 = vsub.f32 %v3390_v3, %v3937_v5  ;;  %v3449_v52 = vand.u32 4294901760, %v1212_v32 }
  0x98   :  { %2716 = vmatpush3.msra.mxu0 %v818_v46  ;;  %2717 = vmatprep.mubr.msk.f32.mxu0 %vm3019_vm0, %v3018_v2  ;;  %v1533_v46 = vsub.f32 %v3324_v27, %v3351_v38  ;;  %v1203_v2 = vsel %vm1189_vm13, %v1162_v48, 0  ;;  %v1209_v4 = vsel %vm1189_vm13, %v1164_v43, 0  ;;  %v1168_v48 = vld [vmem:[%s3924_s1 + $0x50] sm:$0xff]  ;;  %v1218_v43 = vsel %vm1189_vm13, %v1167_v37, 0 }
  0x99   :  { %2725 = vmatprep.subr.mxu0 %v3194_v23  ;;  %2769 = vmatprep.subr.mxu1 %v1506_v35  ;;  %v3404_v9 = vand.u32 4294901760, %v1203_v2  ;;  %v3417_v16 = vand.u32 4294901760, %v1209_v4  ;;  %v3468_v0 = vand.u32 4294901760, %v1218_v43 }
  0x9a   :  { %2770 = vmatpush3.msra.mxu1 %v1506_v35  ;;  %v1215_v35 = vsel %vm1189_vm13, %v1166_v11, 0  ;;  %v3479_v11 = vsub.f32 %v1212_v32, %v3449_v52 }
  0x9b   :  { %2718 = vmatmul.mubr.f32.vlgmr.msra.gmra.mxu0 %v3197_v39  ;;  %2771 = vmatprep.subr.mxu1 %v1513_v49  ;;  %v1534_v39 = vand.u32 4294901760, %v1533_v46  ;;  %3948 = vst [vmem:[#allocation6_spill] sm:$0xff] %v3417_v16  ;;  %v3426_v30 = vsub.f32 %v1203_v2, %v3404_v9  ;;  %v3442_v41 = vsub.f32 %v1209_v4, %v3417_v16  ;;  %v3451_v53 = vand.u32 4294901760, %v1215_v35  ;;  %v1170_v4 = vld [vmem:[%s3924_s1 + $0x60] sm:$0xff] }
  0x9c   :  { %2726 = vmatpush3.msra.mxu0 %v3194_v23  ;;  %2772 = vmatpush3.msra.mxu1 %v1513_v49  ;;  %v3933_v49 = vand.u32 4294901760, %v3421_v28  ;;  %v1221_v2 = vsel %vm1189_vm13, %v1168_v48, 0  ;;  %v1227_v32 = vsel %vm1189_vm13, %v1170_v4, 0  ;;  %v3507_v1 = vsub.f32 %v1218_v43, %v3468_v0  ;;  %v1172_v4 = vld [vmem:[%s3924_s1 + $0x70] sm:$0xff] }
  0x9d   :  { %2727 = vmatprep.subr.mxu0 %v3213_v51  ;;  %2773 = vmatprep.subr.mxu1 %v1520_v36  ;;  %v3932_v46 = vand.u32 4294901760, %v3426_v30  ;;  %v3936_v59 = vand.u32 4294901760, %v3442_v41  ;;  %v3521_v5 = vand.u32 4294901760, %v1227_v32 }
  0x9e   :  { %2728 = vmatpush3.msra.mxu0 %v3213_v51  ;;  %2774 = vmatpush3.msra.mxu1 %v1520_v36  ;;  %v1334_v36 = vsub.f32 %v3402_v8, %v3934_v20  ;;  %v1344_v12 = vsub.f32 %v3421_v28, %v3933_v49  ;;  %v3939_v49 = vand.u32 4294901760, %v3479_v11 }
  0x9f   :  { %2729 = vmatprep.subr.mxu0 %v3228_v55  ;;  %2775 = vmatprep.subr.mxu1 %v1527_v42  ;;  %v1354_v37 = vsub.f32 %v3426_v30, %v3932_v46 }
  0xa0   :  { %2730 = vmatpush3.msra.mxu0 %v3228_v55  ;;  %2776 = vmatpush3.msra.mxu1 %v1527_v42  ;;  %v1169_v42 = vld [vmem:[%s3924_s1 + $0x58] sm:$0xff]  ;;  %v1345_v46 = vand.u32 4294901760, %v1344_v12  ;;  %v1233_v12 = vsel %vm1189_vm13, %v1172_v4, 0 }
  0xa1   :  { %2731 = vmatprep.subr.mxu0 %v3241_v60  ;;  %2777 = vmatprep.subr.mxu1 %v1534_v39  ;;  %v1224_v48 = vsel %vm1189_vm13, %v1169_v42, 0  ;;  %v1374_v42 = vsub.f32 %v3442_v41, %v3936_v59  ;;  %v1355_v59 = vand.u32 4294901760, %v1354_v37  ;;  %v1384_v37 = vsub.f32 %v3479_v11, %v3939_v49 }
  0xa2   :  { %2732 = vmatpush3.msra.mxu0 %v3241_v60  ;;  %2778 = vmatpush3.msra.mxu1 %v1534_v39  ;;  %v1325_v39 = vand.u32 4294901760, %v1324_v22  ;;  %v3489_v22 = vand.u32 4294901760, %v1221_v2  ;;  %v1236_v49 = vsel %vm1189_vm13, %v1173_v33, 0 }
  0xa3   :  { %2733 = vmatprep.subr.mxu0 %v3253_v63  ;;  %2741 = vmatprep.mubr.f32.mxu0 %v1315_v19  ;;  %v3482_v19 = vsub.f32 %v1215_v35, %v3451_v53  ;;  %v1171_v35 = vld [vmem:[%s3924_s1 + $0x68] sm:$0xff] }
  0xa4   :  { %2734 = vmatpush3.msra.mxu0 %v3253_v63  ;;  %2779 = vmatprep.subr.mxu1 %v1541_v21  ;;  %v3519_v43 = vsub.f32 %v1221_v2, %v3489_v22  ;;  %v1375_v2 = vand.u32 4294901760, %v1374_v42  ;;  %v3550_v42 = vand.u32 4294901760, %v1233_v12 }
  0xa5   :  { %2735 = vmatprep.subr.mxu0 %v3266_v6  ;;  %2780 = vmatpush3.msra.mxu1 %v1541_v21  ;;  %v1335_v21 = vand.u32 4294901760, %v1334_v36  ;;  %v1364_v36 = vsub.f32 %v3439_v40, %v3935_v54  ;;  %v3940_v20 = vand.u32 4294901760, %v3482_v19  ;;  %v3515_v54 = vand.u32 4294901760, %v1224_v48 }
  0xa6   :  { %2736 = vmatpush3.msra.mxu0 %v3266_v6  ;;  %2782 = vmatmul.mubr.f32.vlgmr.msra.gmra.mxu1 %v3362_v47 }
  0xa7   :  { %2737 = vmatprep.subr.mxu0 %v3292_v15  ;;  %2845 = vmatprep.subr.mxu1 %v3194_v23  ;;  %v3541_v4 = vsub.f32 %v1224_v48, %v3515_v54  ;;  %v1385_v48 = vand.u32 4294901760, %v1384_v37 }
  0xa8   :  { %2738 = vmatpush3.msra.mxu0 %v3292_v15  ;;  %2846 = vmatpush3.msra.mxu1 %v3194_v23 }
  0xa9   :  { %2739 = vmatprep.subr.mxu0 %v3302_v56  ;;  %2784 = vmatprep.mubr.f32.mxu1 %v3374_v50 }
  0xaa   :  { %2740 = vmatpush3.msra.mxu0 %v3302_v56  ;;  %2785 = vmatmul.mubr.f32.gmra.mxu1 %v3396_v61 }
  0xab   :  { %2742 = vmatmul.mubr.f32.vlgmr.msra.gmra.mxu0 %v1325_v39  ;;  %2805 = vmatprep.subr.mxu0 %v3211_v34  ;;  %v1230_v39 = vsel %vm1189_vm13, %v1171_v35, 0  ;;  %v1394_v35 = vsub.f32 %v3482_v19, %v3940_v20  ;;  %v3565_v20 = vand.u32 4294901760, %v1236_v49 }
  0xac   :  { %2806 = vmatpush3.msra.mxu0 %v3211_v34  ;;  %2744 = vmatprep.mubr.f32.mxu0 %v1335_v21  ;;  %v1365_v34 = vand.u32 4294901760, %v1364_v36  ;;  %v3943_v21 = vand.u32 4294901760, %v3507_v1  ;;  %v3548_v36 = vsub.f32 %v1227_v32, %v3521_v5  ;;  %v1423_v32 = vand.u32 4294901760, %v3541_v4 }
  0xad   :  { %2807 = vmatprep.subr.mxu0 %v3234_v58  ;;  %2847 = vmatprep.subr.mxu1 %v3213_v51 }
  0xae   :  { %2808 = vmatpush3.msra.mxu0 %v3234_v58  ;;  %2848 = vmatpush3.msra.mxu1 %v3213_v51  ;;  %v3543_v58 = vand.u32 4294901760, %v1230_v39 }
  0xaf   :  { %2745 = vmatmul.mubr.f32.gmra.mxu0 %v1345_v46  ;;  %2787 = vmatprep.mubr.f32.mxu1 %v3404_v9  ;;  %v1413_v46 = vand.u32 4294901760, %v3519_v43 }
  0xb0   :  { %2747 = vmatprep.mubr.f32.mxu0 %v1355_v59  ;;  %2809 = vmatprep.subr.mxu0 %v3251_v62  ;;  %v1404_v59 = vsub.f32 %v3507_v1, %v3943_v21  ;;  %v3563_v33 = vsub.f32 %v1230_v39, %v3543_v58  ;;  %v3573_v21 = vsub.f32 %v1233_v12, %v3550_v42 }
  0xb1   :  { %2788 = vmatmul.mubr.f32.gmra.mxu1 %v3415_v7  ;;  %2810 = vmatpush3.msra.mxu0 %v3251_v62  ;;  %v1395_v62 = vand.u32 4294901760, %v1394_v35  ;;  %v3585_v12 = vsub.f32 %v1236_v49, %v3565_v20 }
  0xb2   :  { %2849 = vmatprep.subr.mxu1 %v3228_v55  ;;  %2790 = vmatprep.mubr.f32.mxu1 %v3417_v16  ;;  %v1414_v16 = vsub.f32 %v3519_v43, %v1413_v46  ;;  %v1405_v39 = vand.u32 4294901760, %v1404_v59  ;;  %v1443_v37 = vand.u32 4294901760, %v3563_v33 }
  0xb3   :  { %2748 = vmatmul.mubr.f32.gmra.mxu0 %v1365_v34  ;;  %2850 = vmatpush3.msra.mxu1 %v3228_v55  ;;  %v1433_v34 = vand.u32 4294901760, %v3548_v36  ;;  %v1463_v59 = vand.u32 4294901760, %v3585_v12 }
  0xb4   :  { %2750 = vmatprep.mubr.f32.mxu0 %v1375_v2  ;;  %2811 = vmatprep.subr.mxu0 %v3274_v10  ;;  %v1424_v2 = vsub.f32 %v3541_v4, %v1423_v32 }
  0xb5   :  { %2791 = vmatmul.mubr.f32.gmra.mxu1 %v3449_v52  ;;  %2812 = vmatpush3.msra.mxu0 %v3274_v10  ;;  %v1415_v10 = vand.u32 4294901760, %v1414_v16  ;;  %v1434_v35 = vsub.f32 %v3548_v36, %v1433_v34  ;;  %v1444_v16 = vsub.f32 %v3563_v33, %v1443_v37 }
  0xb6   :  { %2851 = vmatprep.subr.mxu1 %v3241_v60  ;;  %2793 = vmatprep.mubr.f32.mxu1 %v3451_v53  ;;  %v1425_v49 = vand.u32 4294901760, %v1424_v2  ;;  %v1464_v2 = vsub.f32 %v3585_v12, %v1463_v59 }
  0xb7   :  { %2751 = vmatmul.mubr.f32.gmra.mxu0 %v1385_v48  ;;  %2852 = vmatpush3.msra.mxu1 %v3241_v60  ;;  %v1453_v48 = vand.u32 4294901760, %v3573_v21 }
  0xb8   :  { %2753 = vmatprep.mubr.f32.mxu0 %v1395_v62  ;;  %2813 = vmatprep.subr.mxu0 %v3290_v14  ;;  %v1435_v62 = vand.u32 4294901760, %v1434_v35  ;;  %v3949_v35 = vand.u32 4294901760, %v3341_v31 }
  0xb9   :  { %2794 = vmatmul.mubr.f32.gmra.mxu1 %v3468_v0  ;;  %2814 = vmatpush3.msra.mxu0 %v3290_v14  ;;  %v1454_v14 = vsub.f32 %v3573_v21, %v1453_v48 }
  0xba   :  { %2853 = vmatprep.subr.mxu1 %v3253_v63  ;;  %2796 = vmatprep.mubr.f32.mxu1 %v3489_v22 }
  0xbb   :  { %2754 = vmatmul.mubr.f32.gmra.mxu0 %v1405_v39  ;;  %2854 = vmatpush3.msra.mxu1 %v3253_v63  ;;  %v1445_v39 = vand.u32 4294901760, %v1444_v16 }
  0xbc   :  { %2756 = vmatprep.mubr.f32.mxu0 %v1415_v10  ;;  %2815 = vmatprep.subr.mxu0 %v3300_v26  ;;  %v1455_v10 = vand.u32 4294901760, %v1454_v14 }
  0xbd   :  { %2797 = vmatmul.mubr.f32.gmra.mxu1 %v3515_v54  ;;  %2816 = vmatpush3.msra.mxu0 %v3300_v26  ;;  %v1465_v26 = vand.u32 4294901760, %v1464_v2 }
  0xbe   :  { %2855 = vmatprep.subr.mxu1 %v3266_v6  ;;  %2799 = vmatprep.mubr.f32.mxu1 %v3521_v5 }
  0xbf   :  { %2757 = vmatmul.mubr.f32.gmra.mxu0 %v1425_v49  ;;  %2856 = vmatpush3.msra.mxu1 %v3266_v6 }
  0xc0   :  { %2759 = vmatprep.mubr.f32.mxu0 %v1435_v62  ;;  %2817 = vmatprep.subr.mxu0 %v3324_v27 }
  0xc1   :  { %2800 = vmatmul.mubr.f32.gmra.mxu1 %v3543_v58  ;;  %2818 = vmatpush3.msra.mxu0 %v3324_v27  ;;  %v3950_v27 = vand.u32 4294901760, %v3390_v3 }
  0xc2   :  { %2857 = vmatprep.subr.mxu1 %v3292_v15  ;;  %2802 = vmatprep.mubr.f32.mxu1 %v3550_v42 }
  0xc3   :  { %2760 = vmatmul.mubr.f32.gmra.mxu0 %v1445_v39  ;;  %2858 = vmatpush3.msra.mxu1 %v3292_v15 }
  0xc4   :  { %2762 = vmatprep.mubr.f32.mxu0 %v1455_v10  ;;  %2819 = vmatprep.subr.mxu0 %v3332_v44 }
  0xc5   :  { %2803 = vmatmul.mubr.f32.gmra.mxu1 %v3565_v20  ;;  %2820 = vmatpush3.msra.mxu0 %v3332_v44  ;;  %v3951_v44 = vand.u32 4294901760, %v3402_v8 }
  0xc6   :  { %2859 = vmatprep.subr.mxu1 %v3302_v56  ;;  %2861 = vmatprep.mubr.f32.mxu1 %v3949_v35 }
  0xc7   :  { %2763 = vmatmul.mubr.f32.gmra.mxu0 %v1465_v26  ;;  %2860 = vmatpush3.msra.mxu1 %v3302_v56 }
  0xc8   :  { %2821 = vmatprep.mubr.f32.mxu0 %v3341_v31  ;;  %2885 = vmatprep.subr.mxu0 %v3231_v57  ;;  %v3952_v31 = vand.u32 4294901760, %v3421_v28 }
  0xc9   :  { %2862 = vmatmul.mubr.f32.vlgmr.msra.gmra.mxu1 %v3950_v27  ;;  %2925 = vmatprep.subr.mxu1 %v3194_v23 }
  0xca   :  { %2926 = vmatpush3.msra.mxu1 %v3194_v23  ;;  %2864 = vmatprep.mubr.f32.mxu1 %v3951_v44  ;;  %v3953_v23 = vand.u32 4294901760, %v3426_v30 }
  0xcb   :  { %2822 = vmatmul.mubr.f32.vlgmr.msra.gmra.mxu0 %v3390_v3  ;;  %2927 = vmatprep.subr.mxu1 %v3213_v51 }
  0xcc   :  { %2886 = vmatpush3.msra.mxu0 %v3231_v57  ;;  %2824 = vmatprep.mubr.f32.mxu0 %v3402_v8  ;;  %v3954_v57 = vand.u32 4294901760, %v3439_v40 }
  0xcd   :  { %2887 = vmatprep.subr.mxu0 %v3264_v24  ;;  %2865 = vmatmul.mubr.f32.gmra.mxu1 %v3952_v31 }
  0xce   :  { %2888 = vmatpush3.msra.mxu0 %v3264_v24  ;;  %2928 = vmatpush3.msra.mxu1 %v3213_v51  ;;  %v3955_v24 = vand.u32 4294901760, %v3442_v41  ;;  %v3956_v51 = vand.u32 4294901760, %v3479_v11 }
  0xcf   :  { %2825 = vmatmul.mubr.f32.gmra.mxu0 %v3421_v28  ;;  %2867 = vmatprep.mubr.f32.mxu1 %v3953_v23 }
  0xd0   :  { %2827 = vmatprep.mubr.f32.mxu0 %v3426_v30  ;;  %2889 = vmatprep.subr.mxu0 %v3287_v13 }
  0xd1   :  { %2868 = vmatmul.mubr.f32.gmra.mxu1 %v3954_v57  ;;  %2890 = vmatpush3.msra.mxu0 %v3287_v13  ;;  %v3957_v13 = vand.u32 4294901760, %v3482_v19 }
  0xd2   :  { %2929 = vmatprep.subr.mxu1 %v3228_v55  ;;  %2870 = vmatprep.mubr.f32.mxu1 %v3955_v24 }
  0xd3   :  { %2828 = vmatmul.mubr.f32.gmra.mxu0 %v3439_v40  ;;  %2930 = vmatpush3.msra.mxu1 %v3228_v55  ;;  %v3958_v55 = vand.u32 4294901760, %v3507_v1 }
  0xd4   :  { %2830 = vmatprep.mubr.f32.mxu0 %v3442_v41  ;;  %2891 = vmatprep.subr.mxu0 %v3306_v17 }
  0xd5   :  { %2871 = vmatmul.mubr.f32.gmra.mxu1 %v3956_v51  ;;  %2892 = vmatpush3.msra.mxu0 %v3306_v17 }
  0xd6   :  { %2931 = vmatprep.subr.mxu1 %v3241_v60  ;;  %2873 = vmatprep.mubr.f32.mxu1 %v3957_v13 }
  0xd7   :  { %2831 = vmatmul.mubr.f32.gmra.mxu0 %v3479_v11  ;;  %2932 = vmatpush3.msra.mxu1 %v3241_v60 }
  0xd8   :  { %2833 = vmatprep.mubr.f32.mxu0 %v3482_v19  ;;  %2893 = vmatprep.subr.mxu0 %v3321_v25 }
  0xd9   :  { %2874 = vmatmul.mubr.f32.gmra.mxu1 %v3958_v55  ;;  %2894 = vmatpush3.msra.mxu0 %v3321_v25 }
  0xda   :  { %2933 = vmatprep.subr.mxu1 %v3253_v63  ;;  %2876 = vmatprep.mubr.f32.mxu1 %v1413_v46  ;;  %v1155_v46 = vld [vmem:[%s3929_s6] sm:$0x1] }
  0xdb   :  { %2834 = vmatmul.mubr.f32.gmra.mxu0 %v3507_v1  ;;  %2934 = vmatpush3.msra.mxu1 %v3253_v63  ;;  %v3959_v1 = vld [vmem:[#allocation6_spill] sm:$0xff] }
  0xdc   :  { %2836 = vmatprep.mubr.f32.mxu0 %v3519_v43  ;;  %2895 = vmatprep.subr.mxu0 %v3329_v29 }
  0xdd   :  { %2877 = vmatmul.mubr.f32.gmra.mxu1 %v1423_v32  ;;  %2896 = vmatpush3.msra.mxu0 %v3329_v29 }
  0xde   :  { %2935 = vmatprep.subr.mxu1 %v3266_v6  ;;  %2879 = vmatprep.mubr.f32.mxu1 %v1433_v34 }
  0xdf   :  { %2837 = vmatmul.mubr.f32.gmra.mxu0 %v3541_v4  ;;  %2936 = vmatpush3.msra.mxu1 %v3266_v6 }
  0xe0   :  { %2839 = vmatprep.mubr.f32.mxu0 %v3548_v36  ;;  %2897 = vmatprep.subr.mxu0 %v3351_v38 }
  0xe1   :  { %2880 = vmatmul.mubr.f32.gmra.mxu1 %v1443_v37  ;;  %2898 = vmatpush3.msra.mxu0 %v3351_v38 }
  0xe2   :  { %2937 = vmatprep.subr.mxu1 %v3292_v15  ;;  %2882 = vmatprep.mubr.f32.mxu1 %v1453_v48 }
  0xe3   :  { %2840 = vmatmul.mubr.f32.gmra.mxu0 %v3563_v33  ;;  %2938 = vmatpush3.msra.mxu1 %v3292_v15 }
  0xe4   :  { %2842 = vmatprep.mubr.f32.mxu0 %v3573_v21  ;;  %2899 = vmatprep.subr.mxu0 %v3360_v45  ;;  %v3960_v21 = vlaneseq }
  0xe5   :  { %2883 = vmatmul.mubr.f32.gmra.mxu1 %v1463_v59  ;;  %2900 = vmatpush3.msra.mxu0 %v3360_v45 }
  0xe6   :  { %2939 = vmatprep.subr.mxu1 %v3302_v56  ;;  %2941 = vmatprep.mubr.f32.mxu1 %v3308_v18  ;;  %v2437_v4 = vshrl.u32 %v3960_v21, 7 }
  0xe7   :  { %2843 = vmatmul.mubr.f32.gmra.mxu0 %v3585_v12  ;;  %2940 = vmatpush3.msra.mxu1 %v3302_v56 }
  0xe8   :  { %2901 = vmatprep.mubr.f32.mxu0 %v3308_v18  ;;  %v2438_v32 = vsub.s32 0, %v2437_v4 }
  0xe9   :  { %2942 = vmatmul.mubr.f32.vlgmr.msra.gmra.mxu1 %v3362_v47 }
  0xea   :  { %2944 = vmatprep.mubr.f32.mxu1 %v3374_v50 }
  0xeb   :  { %2902 = vmatmul.mubr.f32.vlgmr.msra.gmra.mxu0 %v3362_v47 }
  0xec   :  { %2904 = vmatprep.mubr.f32.mxu0 %v3374_v50 }
  0xed   :  { %2945 = vmatmul.mubr.f32.gmra.mxu1 %v3396_v61 }
  0xee   :  { %2947 = vmatprep.mubr.f32.mxu1 %v3404_v9 }
  0xef   :  { %2905 = vmatmul.mubr.f32.gmra.mxu0 %v3396_v61 }
  0xf0   :  { %2907 = vmatprep.mubr.f32.mxu0 %v3404_v9 }
  0xf1   :  { %2948 = vmatmul.mubr.f32.gmra.mxu1 %v3415_v7 }
  0xf2   :  { %2950 = vmatprep.mubr.f32.mxu1 %v3959_v1 }
  0xf3   :  { %2908 = vmatmul.mubr.f32.gmra.mxu0 %v3415_v7 }
  0xf4   :  { %2910 = vmatprep.mubr.f32.mxu0 %v3959_v1 }
  0xf5   :  { %2951 = vmatmul.mubr.f32.gmra.mxu1 %v3449_v52 }
  0xf6   :  { %2953 = vmatprep.mubr.f32.mxu1 %v3451_v53 }
  0xf7   :  { %2911 = vmatmul.mubr.f32.gmra.mxu0 %v3449_v52 }
  0xf8   :  { %2913 = vmatprep.mubr.f32.mxu0 %v3451_v53 }
  0xf9   :  { %2954 = vmatmul.mubr.f32.gmra.mxu1 %v3468_v0 }
  0xfa   :  { %2956 = vmatprep.mubr.f32.mxu1 %v3489_v22 }
  0xfb   :  { %2914 = vmatmul.mubr.f32.gmra.mxu0 %v3468_v0 }
  0xfc   :  { %2916 = vmatprep.mubr.f32.mxu0 %v3489_v22 }
  0xfd   :  { %2957 = vmatmul.mubr.f32.gmra.mxu1 %v3515_v54 }
  0xfe   :  { %2959 = vmatprep.mubr.f32.mxu1 %v3521_v5 }
  0xff   :  { %2917 = vmatmul.mubr.f32.gmra.mxu0 %v3515_v54 }
 0x100   :  { %2919 = vmatprep.mubr.f32.mxu0 %v3521_v5 }
 0x101   :  { %2960 = vmatmul.mubr.f32.gmra.mxu1 %v3543_v58 }
 0x102   :  { %2962 = vmatprep.mubr.f32.mxu1 %v3550_v42 }
 0x103   :  { %2920 = vmatmul.mubr.f32.gmra.mxu0 %v3543_v58 }
 0x104   :  { %2922 = vmatprep.mubr.f32.mxu0 %v3550_v42 }
 0x105   :  { %2963 = vmatmul.mubr.f32.gmra.mxu1 %v3565_v20 }
 0x107   :  { %2923 = vmatmul.mubr.f32.gmra.mxu0 %v3565_v20 }
 0x13f   :  { %v408_v60 = vpop.f32.mrf.mxu1 }
 0x141   :  { %v2674_v63 = vpop.f32.mrf.mxu1 }
 0x143   :  { %v556_v6 = vpop.f32.mrf.mxu1 }
 0x145   :  { %v2684_v15 = vpop.f32.mrf.mxu1 }
 0x147   :  { %v332_v56 = vpop.f32.mrf.mxu0  ;;  %v702_v17 = vpop.f32.mrf.mxu1 }
 0x148   :  { %v409_v18 = vadd.f32 %v408_v60, %v332_v56 }
 0x149   :  { %v2669_v25 = vpop.f32.mrf.mxu0  ;;  %v2694_v29 = vpop.f32.mrf.mxu1 }
 0x14b   :  { %v482_v38 = vpop.f32.mrf.mxu0  ;;  %v857_v45 = vpop.f32.mrf.mxu1 }
 0x14c   :  { %v483_v47 = vadd.f32 %v482_v38, %v409_v18 }
 0x14d   :  { %v2679_v50 = vpop.f32.mrf.mxu0  ;;  %v2704_v3 = vpop.f32.mrf.mxu1 }
 0x14e   :  { %v557_v61 = vadd.f32 %v556_v6, %v483_v47 }
 0x14f   :  { %v630_v8 = vpop.f32.mrf.mxu0  ;;  %v1005_v9 = vpop.f32.mrf.mxu1 }
 0x150   :  { %v631_v5 = vadd.f32 %v630_v8, %v557_v61 }
 0x151   :  { %v2689_v7 = vpop.f32.mrf.mxu0  ;;  %v2714_v28 = vpop.f32.mrf.mxu1 }
 0x152   :  { %v703_v20 = vadd.f32 %v702_v17, %v631_v5 }
 0x153   :  { %v781_v30 = vpop.f32.mrf.mxu0  ;;  %v1151_v40 = vpop.f32.mrf.mxu1 }
 0x154   :  { %v782_v41 = vadd.f32 %v781_v30, %v703_v20 }
 0x155   :  { %v2699_v52 = vpop.f32.mrf.mxu0  ;;  %v2724_v53 = vpop.f32.mrf.mxu1 }
 0x156   :  { %v858_v54 = vadd.f32 %v857_v45, %v782_v41 }
 0x157   :  { %v931_v0 = vpop.f32.mrf.mxu0 }
 0x158   :  { %v932_v11 = vadd.f32 %v931_v0, %v858_v54 }
 0x159   :  { %v2709_v19 = vpop.f32.mrf.mxu0 }
 0x15a   :  { %v1006_v22 = vadd.f32 %v1005_v9, %v932_v11  ;;  %v3813_v19 = vld [vmem:[%s3926_s3] ss:$0 sm:$0xff]  ;;  %s3026_s3 = smov [#allocation3]  }
 0x15b   :  { %v1079_v43 = vpop.f32.mrf.mxu0  ;;  %s2477_s5 = sshll.u32 %s3026_s3, 4  ;;  %s2478_s5 = int_to_ptr.vmem [resolvable:$true] %s2477_s5 }
 0x15c   :  { %v1080_v58 = vadd.f32 %v1079_v43, %v1006_v22  ;;  %s2996_s26 = scalar_lea.vmem %s2478_s5, 2048  ;;  %p3001_p1 = scmp.lt.s32.totalorder %s2478_s5, %s2478_s5 }
 0x15d   :  { %v2719_v36 = vpop.f32.mrf.mxu0  ;;  %p2997_p0 = scmp.ne.s32.totalorder %s2478_s5, %s2996_s26  ;;  %p3002_p2 = scmp.lt.s32.totalorder %s2996_s26, %s2996_s26 }
 0x15e   :  { %v1152_v42 = vadd.f32 %v1151_v40, %v1080_v58 }
 0x15f   :  { %p3003_p3 = por %p3002_p2, %p3001_p1 }
 0x160   :  { %v1156_v33 = vadd.f32 %v1155_v46, %v1152_v42 }
 0x161   :  { %p3004_p4 = pnand %p3003_p3, %p2997_p0 }
 0x162   :  { %v1157_v34 = vmax.f32 %v1156_v33, 0.0 }
 0x164   :  { %v3740_v37 = vrot.slane %v1157_v34, %v2438_v32 }
 0x166   :  { %v2783_v12 = vpop.f32.mrf.mxu1 }
 0x168   :  { %v3742_v48 = vpop.f32.mrf.mxu1 }
 0x16a   :  { %v3744_v49 = vpop.f32.mrf.mxu1 }
 0x16b   :  { %v2743_v16 = vpop.f32.mrf.mxu0 }
 0x16c   :  { %v3746_v62 = vpop.f32.mrf.mxu1  ;;  %v1328_v58 = vadd.f32 %v2743_v16, %v3813_v19 }
 0x16d   :  { %v1317_v59 = vpop.f32.mrf.mxu0 }
 0x16e   :  { %v1318_v42 = vadd.f32 %v3813_v19, %v1317_v59  ;;  %v1585_v34 = vadd.f32 %v2783_v12, %v1328_v58 }
 0x16f   :  { %v2746_v14 = vpop.f32.mrf.mxu0 }
 0x171   :  { %v1337_v39 = vpop.f32.mrf.mxu0  ;;  %v3748_v2 = vpop.f32.mrf.mxu1 }
 0x172   :  { %v1338_v16 = vadd.f32 %v3813_v19, %v1337_v39 }
 0x173   :  { %v2749_v10 = vpop.f32.mrf.mxu0  ;;  %v3750_v26 = vpop.f32.mrf.mxu1 }
 0x175   :  { %v3752_v35 = vpop.f32.mrf.mxu0  ;;  %v3754_v27 = vpop.f32.mrf.mxu1 }
 0x177   :  { %v3756_v44 = vpop.f32.mrf.mxu0  ;;  %v3758_v31 = vpop.f32.mrf.mxu1 }
 0x179   :  { %v3760_v23 = vpop.f32.mrf.mxu0  ;;  %v3762_v57 = vpop.f32.mrf.mxu1 }
 0x17b   :  { %v3764_v24 = vpop.f32.mrf.mxu0  ;;  %v3766_v51 = vpop.f32.mrf.mxu1 }
 0x17d   :  { %v3768_v13 = vpop.f32.mrf.mxu0  ;;  %v3770_v55 = vpop.f32.mrf.mxu1 }
 0x17f   :  { %v3772_v1 = vpop.f32.mrf.mxu0  ;;  %v3774_v60 = vpop.f32.mrf.mxu1 }
 0x181   :  { %v3776_v63 = vpop.f32.mrf.mxu0  ;;  %v3778_v6 = vpop.f32.mrf.mxu1 }
 0x183   :  { %v3780_v15 = vpop.f32.mrf.mxu0  ;;  %v3782_v56 = vpop.f32.mrf.mxu1 }
 0x184   :  { %3961 = vst [vmem:[#allocation6_spill] sm:$0xff] %v3782_v56 }
 0x185   :  { %v3784_v17 = vpop.f32.mrf.mxu0  ;;  %v3786_v18 = vpop.f32.mrf.mxu1 }
 0x186   :  { %3962 = vst [vmem:[#allocation7_spill] sm:$0xff] %v3786_v18 }
 0x187   :  { %v3788_v25 = vpop.f32.mrf.mxu0  ;;  %v3790_v29 = vpop.f32.mrf.mxu1 }
 0x188   :  { %3963 = vst [vmem:[#allocation8_spill] sm:$0xff] %v3790_v29  ;;  %v1348_v29 = vadd.f32 %v2746_v14, %v3813_v19  ;;  %v1358_v14 = vadd.f32 %v3813_v19, %v3752_v35  ;;  %v1378_v35 = vadd.f32 %v3813_v19, %v3760_v23 }
 0x189   :  { %v3792_v38 = vpop.f32.mrf.mxu0  ;;  %v2863_v45 = vpop.f32.mrf.mxu1 }
 0x18a   :  { %3964 = vst [vmem:[#allocation9_spill] sm:$0xff] %v3792_v38  ;;  %v1615_v23 = vadd.f32 %v3758_v31, %v1378_v35 }
 0x18b   :  { %v2823_v47 = vpop.f32.mrf.mxu0  ;;  %v1942_v50 = vpop.f32.mrf.mxu1 }
 0x18c   :  { %v1764_v38 = vadd.f32 %v2823_v47, %v1585_v34 }
 0x18d   :  { %v1756_v3 = vpop.f32.mrf.mxu0  ;;  %v2866_v61 = vpop.f32.mrf.mxu1 }
 0x18f   :  { %v2826_v8 = vpop.f32.mrf.mxu0  ;;  %v1958_v9 = vpop.f32.mrf.mxu1 }
 0x191   :  { %v1770_v5 = vpop.f32.mrf.mxu0  ;;  %v3794_v7 = vpop.f32.mrf.mxu1 }
 0x193   :  { %v2829_v28 = vpop.f32.mrf.mxu0  ;;  %v3796_v20 = vpop.f32.mrf.mxu1 }
 0x195   :  { %v1784_v30 = vpop.f32.mrf.mxu0  ;;  %v3798_v40 = vpop.f32.mrf.mxu1 }
 0x197   :  { %v2832_v41 = vpop.f32.mrf.mxu0  ;;  %v3800_v52 = vpop.f32.mrf.mxu1 }
 0x199   :  { %v3802_v53 = vpop.f32.mrf.mxu0  ;;  %v3804_v54 = vpop.f32.mrf.mxu1 }
 0x19b   :  { %v3806_v0 = vpop.f32.mrf.mxu0  ;;  %v3808_v11 = vpop.f32.mrf.mxu1 }
 0x19d   :  { %v3815_v22 = vpop.f32.mrf.mxu0  ;;  %v3817_v43 = vpop.f32.mrf.mxu1 }
 0x19e   :  { %3965 = vst [vmem:[#allocation10_spill] sm:$0xff] %v3817_v43 }
 0x19f   :  { %v3819_v21 = vpop.f32.mrf.mxu0  ;;  %v3821_v4 = vpop.f32.mrf.mxu1 }
 0x1a0   :  { %3966 = vst [vmem:[#allocation11_spill] sm:$0xff] %v3821_v4  ;;  %v1579_v4 = vadd.f32 %v3742_v48, %v1318_v42  ;;  %v1591_v48 = vadd.f32 %v3746_v62, %v1338_v16  ;;  %v1951_v42 = vadd.f32 %v2863_v45, %v1764_v38 }
 0x1a1   :  { %v3824_v46 = vpop.f32.mrf.mxu0  ;;  %v3826_v36 = vpop.f32.mrf.mxu1 }
 0x1a2   :  { %3967 = vst [vmem:[#allocation12_spill] sm:$0xff] %v3826_v36  ;;  %v1368_v36 = vadd.f32 %v2749_v10, %v3813_v19  ;;  %v1757_v12 = vadd.f32 %v1756_v3, %v1579_v4  ;;  %v1388_v10 = vadd.f32 %v3756_v44, %v3813_v19  ;;  %v1603_v3 = vadd.f32 %v3750_v26, %v1358_v14 }
 0x1a3   :  { %v3829_v32 = vpop.f32.mrf.mxu0  ;;  %v3831_v33 = vpop.f32.mrf.mxu1  ;;  %v1408_v44 = vadd.f32 %v3764_v24, %v3813_v19 }
 0x1a4   :  { %3968 = vst [vmem:[#allocation13_spill] sm:$0xff] %v3831_v33  ;;  %v1597_v33 = vadd.f32 %v3744_v49, %v1348_v29  ;;  %v1609_v47 = vadd.f32 %v3748_v2, %v1368_v36  ;;  %v1771_v49 = vadd.f32 %v1770_v5, %v1591_v48  ;;  %v1621_v2 = vadd.f32 %v3754_v27, %v1388_v10 }
 0x1a5   :  { %v3834_v18 = vpop.f32.mrf.mxu0  ;;  %v3836_v43 = vpop.f32.mrf.mxu1  ;;  %v1785_v36 = vadd.f32 %v1784_v30, %v1603_v3  ;;  %v1799_v48 = vadd.f32 %v3802_v53, %v1615_v23 }
 0x1a6   :  { %3969 = vst [vmem:[#allocation14_spill] sm:$0xff] %v3836_v43  ;;  %v1778_v39 = vadd.f32 %v2826_v8, %v1597_v33  ;;  %v1792_v4 = vadd.f32 %v2829_v28, %v1609_v47  ;;  %v1959_v33 = vadd.f32 %v1958_v9, %v1771_v49  ;;  %v1398_v28 = vadd.f32 %v3813_v19, %v3768_v13 }
 0x1a7   :  { %v3841_v56 = vpop.f32.mrf.mxu0  ;;  %v3843_v59 = vpop.f32.mrf.mxu1  ;;  %v1633_v9 = vadd.f32 %v3762_v57, %v1408_v44  ;;  %v1975_v31 = vadd.f32 %v3796_v20, %v1785_v36  ;;  %v1418_v57 = vadd.f32 %v3813_v19, %v3776_v63 }
 0x1a8   :  { %3970 = vst [vmem:[#allocation15_spill] sm:$0xff] %v3841_v56  ;;  %3971 = vst [vmem:[#allocation16_spill] sm:$0xff] %v3843_v59  ;;  %v1943_v56 = vadd.f32 %v1942_v50, %v1757_v12  ;;  %v1967_v38 = vadd.f32 %v2866_v61, %v1778_v39  ;;  %v1983_v61 = vadd.f32 %v3794_v7, %v1792_v4 }
 0x1a9   :  { %v3848_v58 = vpop.f32.mrf.mxu0  ;;  %v2943_v43 = vpop.f32.mrf.mxu1  ;;  %v1627_v10 = vadd.f32 %v3766_v51, %v1398_v28  ;;  %v1448_v51 = vadd.f32 %v3780_v15, %v3813_v19  ;;  %v1639_v44 = vadd.f32 %v3774_v60, %v1418_v57  ;;  %v1468_v60 = vadd.f32 %v3788_v25, %v3813_v19 }
 0x1aa   :  { %3972 = vst [vmem:[#allocation17_spill] sm:$0xff] %v3848_v58 }
 0x1ab   :  { %v2903_v34 = vpop.f32.mrf.mxu0  ;;  %v2326_v59 = vpop.f32.mrf.mxu1  ;;  %v1813_v63 = vadd.f32 %v3815_v22, %v1627_v10 }
 0x1ac   :  { %v2164_v29 = vadd.f32 %v2903_v34, %v1951_v42 }
 0x1ad   :  { %v2157_v58 = vpop.f32.mrf.mxu0  ;;  %v2946_v62 = vpop.f32.mrf.mxu1 }
 0x1ae   :  { %v2333_v45 = vadd.f32 %v2943_v43, %v2164_v29  ;;  %v2158_v8 = vadd.f32 %v2157_v58, %v1943_v56  ;;  %v1806_v56 = vadd.f32 %v2832_v41, %v1621_v2 }
 0x1af   :  { %v2906_v50 = vpop.f32.mrf.mxu0  ;;  %v2338_v5 = vpop.f32.mrf.mxu1 }
 0x1b0   :  { %v2421_v16 = vmax.f32 %v2333_v45, 0.0  ;;  %v2327_v26 = vadd.f32 %v2326_v59, %v2158_v8  ;;  %v2176_v12 = vadd.f32 %v2906_v50, %v1967_v38  ;;  %v1428_v59 = vadd.f32 %v3772_v1, %v3813_v19 }
 0x1b1   :  { %v2169_v43 = vpop.f32.mrf.mxu0  ;;  %v2949_v27 = vpop.f32.mrf.mxu1  ;;  %v1999_v34 = vadd.f32 %v3798_v40, %v1806_v56  ;;  %v1820_v1 = vadd.f32 %v3806_v0, %v1633_v9 }
 0x1b2   :  { %v2441_v14 = vadd.f32 %v3740_v37, %v2421_v16  ;;  %v2420_v24 = vmax.f32 %v2327_v26, 0.0  ;;  %v2345_v30 = vadd.f32 %v2946_v62, %v2176_v12  ;;  %v2170_v58 = vadd.f32 %v2169_v43, %v1959_v33  ;;  %v3973_v43 = vld [vmem:[#allocation6_spill] sm:$0xff] }
 0x1b3   :  { %v2909_v13 = vpop.f32.mrf.mxu0  ;;  %v2350_v42 = vpop.f32.mrf.mxu1  ;;  %v1645_v4 = vadd.f32 %v3770_v55, %v1428_v59  ;;  %v1991_v62 = vadd.f32 %v3800_v52, %v1799_v48  ;;  %v1438_v55 = vadd.f32 %v3813_v19, %v3784_v17  ;;  %v2015_v36 = vadd.f32 %v3804_v54, %v1820_v1  ;;  %v3976_v48 = vld [vmem:[#allocation7_spill] sm:$0xff] }
 0x1b4   :  { %2457 = vst [vmem:[#allocation3 + $0x8] sm:$0xff] %v2441_v14  ;;  %v2440_v7 = vadd.f32 %v3740_v37, %v2420_v24  ;;  %v2423_v41 = vmax.f32 %v2345_v30, 0.0  ;;  %v2339_v39 = vadd.f32 %v2338_v5, %v2170_v58  ;;  %v2188_v47 = vadd.f32 %v2909_v13, %v1983_v61  ;;  %v3974_v14 = vld [vmem:[#allocation9_spill] sm:$0xff]  ;;  %v3975_v24 = vld [vmem:[#allocation10_spill] sm:$0xff] }
 0x1b5   :  { %v2181_v20 = vpop.f32.mrf.mxu0  ;;  %v2952_v49 = vpop.f32.mrf.mxu1  ;;  %v1834_v15 = vadd.f32 %v3819_v21, %v1645_v4  ;;  %v1657_v26 = vadd.f32 %v3778_v6, %v1448_v51  ;;  %v2007_v12 = vadd.f32 %v3808_v11, %v1813_v63  ;;  %v1827_v17 = vadd.f32 %v3824_v46, %v1639_v44  ;;  %v3981_v63 = vld [vmem:[#allocation13_spill] sm:$0xff] }
 0x1b6   :  { %2456 = vst [vmem:[#allocation3] sm:$0xff] %v2440_v7  ;;  %v2443_v53 = vadd.f32 %v3740_v37, %v2423_v41  ;;  %v2422_v29 = vmax.f32 %v2339_v39, 0.0  ;;  %v2357_v3 = vadd.f32 %v2949_v27, %v2188_v47  ;;  %v2182_v35 = vadd.f32 %v2181_v20, %v1975_v31  ;;  %v3979_v20 = vld [vmem:[#allocation12_spill] sm:$0xff] }
 0x1b7   :  { %v2912_v40 = vpop.f32.mrf.mxu0  ;;  %v2362_v38 = vpop.f32.mrf.mxu1  ;;  %v1651_v27 = vadd.f32 %v3973_v43, %v1438_v55  ;;  %v1458_v6 = vadd.f32 %v3813_v19, %v3974_v14  ;;  %v2031_v30 = vadd.f32 %v3975_v24, %v1834_v15  ;;  %v1848_v25 = vadd.f32 %v3829_v32, %v1657_v26  ;;  %v3983_v15 = vld [vmem:[#allocation14_spill] sm:$0xff]  ;;  %v3984_v26 = vld [vmem:[#allocation16_spill] sm:$0xff] }
 0x1b8   :  { %2459 = vst [vmem:[#allocation3 + $0x18] sm:$0xff] %v2443_v53  ;;  %v2442_v0 = vadd.f32 %v3740_v37, %v2422_v29  ;;  %v2425_v45 = vmax.f32 %v2357_v3, 0.0  ;;  %v2351_v8 = vadd.f32 %v2350_v42, %v2182_v35  ;;  %v2200_v2 = vadd.f32 %v2912_v40, %v1999_v34  ;;  %v3977_v42 = vld [vmem:[#allocation11_spill] sm:$0xff]  ;;  %v3978_v34 = vld [vmem:[#allocation8_spill] sm:$0xff] }
 0x1b9   :  { %v2193_v52 = vpop.f32.mrf.mxu0  ;;  %v2955_v50 = vpop.f32.mrf.mxu1  ;;  %v1669_v13 = vadd.f32 %v3976_v48, %v1468_v60  ;;  %v2023_v7 = vadd.f32 %v3977_v42, %v1827_v17  ;;  %v1841_v41 = vadd.f32 %v3834_v18, %v1651_v27  ;;  %v1663_v1 = vadd.f32 %v3978_v34, %v1458_v6  ;;  %v3980_v53 = vld [vmem:[#allocation15_spill] sm:$0xff] }
 0x1ba   :  { %2458 = vst [vmem:[#allocation3 + $0x10] sm:$0xff] %v2442_v0  ;;  %v2445_v22 = vadd.f32 %v3740_v37, %v2425_v45  ;;  %v2424_v5 = vmax.f32 %v2351_v8, 0.0  ;;  %v2369_v33 = vadd.f32 %v2952_v49, %v2200_v2  ;;  %v2194_v16 = vadd.f32 %v2193_v52, %v1991_v62 }
 0x1bb   :  { %v2915_v54 = vpop.f32.mrf.mxu0  ;;  %v2374_v23 = vpop.f32.mrf.mxu1  ;;  %v2047_v49 = vadd.f32 %v3979_v20, %v1848_v25  ;;  %v1862_v29 = vadd.f32 %v3980_v53, %v1669_v13  ;;  %v2039_v40 = vadd.f32 %v3981_v63, %v1841_v41 }
 0x1bc   :  { %2461 = vst [vmem:[#allocation3 + $0x28] sm:$0xff] %v2445_v22  ;;  %v2444_v21 = vadd.f32 %v3740_v37, %v2424_v5  ;;  %v2427_v28 = vmax.f32 %v2369_v33, 0.0  ;;  %v2363_v61 = vadd.f32 %v2362_v38, %v2194_v16  ;;  %v2212_v56 = vadd.f32 %v2915_v54, %v2015_v36  ;;  %v3982_v38 = vld [vmem:[#allocation17_spill] sm:$0xff] }
 0x1bd   :  { %v2205_v11 = vpop.f32.mrf.mxu0  ;;  %v2958_v58 = vpop.f32.mrf.mxu1  ;;  %v1855_v0 = vadd.f32 %v3982_v38, %v1663_v1  ;;  %v2063_v52 = vadd.f32 %v3983_v15, %v1862_v29 }
 0x1be   :  { %2460 = vst [vmem:[#allocation3 + $0x20] sm:$0xff] %v2444_v21  ;;  %v2447_v46 = vadd.f32 %v3740_v37, %v2427_v28  ;;  %v2426_v9 = vmax.f32 %v2363_v61, 0.0  ;;  %v2381_v59 = vadd.f32 %v2955_v50, %v2212_v56  ;;  %v2206_v31 = vadd.f32 %v2205_v11, %v2007_v12 }
 0x1bf   :  { %v2918_v39 = vpop.f32.mrf.mxu0  ;;  %v2386_v19 = vpop.f32.mrf.mxu1  ;;  %v2055_v60 = vadd.f32 %v3984_v26, %v1855_v0 }
 0x1c0   :  { %2463 = vst [vmem:[#allocation3 + $0x38] sm:$0xff] %v2447_v46  ;;  %v2446_v47 = vadd.f32 %v3740_v37, %v2426_v9  ;;  %v2429_v32 = vmax.f32 %v2381_v59, 0.0  ;;  %v2375_v10 = vadd.f32 %v2374_v23, %v2206_v31  ;;  %v2224_v57 = vadd.f32 %v2918_v39, %v2031_v30 }
 0x1c1   :  { %v2217_v3 = vpop.f32.mrf.mxu0  ;;  %v2961_v35 = vpop.f32.mrf.mxu1 }
 0x1c2   :  { %2462 = vst [vmem:[#allocation3 + $0x30] sm:$0xff] %v2446_v47  ;;  %v2449_v4 = vadd.f32 %v3740_v37, %v2429_v32  ;;  %v2428_v18 = vmax.f32 %v2375_v10, 0.0  ;;  %v2393_v51 = vadd.f32 %v2958_v58, %v2224_v57  ;;  %v2218_v62 = vadd.f32 %v2217_v3, %v2023_v7 }
 0x1c3   :  { %v2921_v45 = vpop.f32.mrf.mxu0  ;;  %v2398_v8 = vpop.f32.mrf.mxu1 }
 0x1c4   :  { %2465 = vst [vmem:[#allocation3 + $0x48] sm:$0xff] %v2449_v4  ;;  %v2448_v2 = vadd.f32 %v3740_v37, %v2428_v18  ;;  %v2431_v44 = vmax.f32 %v2393_v51, 0.0  ;;  %v2387_v55 = vadd.f32 %v2386_v19, %v2218_v62  ;;  %v2236_v36 = vadd.f32 %v2921_v45, %v2047_v49 }
 0x1c5   :  { %v2229_v50 = vpop.f32.mrf.mxu0  ;;  %v2964_v17 = vpop.f32.mrf.mxu1 }
 0x1c6   :  { %2464 = vst [vmem:[#allocation3 + $0x40] sm:$0xff] %v2448_v2  ;;  %v2451_v22 = vadd.f32 %v3740_v37, %v2431_v44  ;;  %v2430_v5 = vmax.f32 %v2387_v55, 0.0  ;;  %v2405_v33 = vadd.f32 %v2961_v35, %v2236_v36  ;;  %v2230_v16 = vadd.f32 %v2229_v50, %v2039_v40 }
 0x1c7   :  { %v2924_v12 = vpop.f32.mrf.mxu0  ;;  %v2410_v6 = vpop.f32.mrf.mxu1 }
 0x1c8   :  { %2467 = vst [vmem:[#allocation3 + $0x58] sm:$0xff] %v2451_v22  ;;  %v2450_v54 = vadd.f32 %v3740_v37, %v2430_v5  ;;  %v2433_v23 = vmax.f32 %v2405_v33, 0.0  ;;  %v2399_v21 = vadd.f32 %v2398_v8, %v2230_v16  ;;  %v2248_v28 = vadd.f32 %v2924_v12, %v2063_v52 }
 0x1c9   :  { %v2241_v61 = vpop.f32.mrf.mxu0 }
 0x1ca   :  { %2466 = vst [vmem:[#allocation3 + $0x50] sm:$0xff] %v2450_v54  ;;  %v2453_v56 = vadd.f32 %v3740_v37, %v2433_v23  ;;  %v2432_v43 = vmax.f32 %v2399_v21, 0.0  ;;  %v2417_v27 = vadd.f32 %v2964_v17, %v2248_v28  ;;  %v2242_v14 = vadd.f32 %v2241_v61, %v2055_v60 }
 0x1cc   :  { %2469 = vst [vmem:[#allocation3 + $0x68] sm:$0xff] %v2453_v56  ;;  %v2452_v24 = vadd.f32 %v3740_v37, %v2432_v43  ;;  %v2435_v30 = vmax.f32 %v2417_v27, 0.0  ;;  %v2411_v25 = vadd.f32 %v2410_v6, %v2242_v14 }
 0x1ce   :  { %2468 = vst [vmem:[#allocation3 + $0x60] sm:$0xff] %v2452_v24  ;;  %v2455_v11 = vadd.f32 %v3740_v37, %v2435_v30  ;;  %v2434_v58 = vmax.f32 %v2411_v25, 0.0 }
 0x1d0   :  { %2471 = vst [vmem:[#allocation3 + $0x78] sm:$0xff] %v2455_v11  ;;  %v2454_v46 = vadd.f32 %v3740_v37, %v2434_v58 }
 0x1d2   :  { %2470 = vst [vmem:[#allocation3 + $0x70] sm:$0xff] %v2454_v46 }
 0x1d3   :  { %3007 = shalt.err (!%p3004_p4)
}
 0x1d4   :  { %s3027_s0 = smov 128   ;;  %s3028_s27 = smov 8  }
 0x1d5   :  { %2483 = dma.vmem_to_hbm [thread:$0]  %s2478_s5, 2048, %s3930_s7, [#allocation4], %s3027_s0, %s3027_s0, %s3028_s27  }
 0x1d6   :  { %3016 = dma.done.wait [#allocation4], 2048  }
 0x1d7   :  { %3017 = vsyncadd [#allocation4], 4294965248 }
 0x1d8   :  { %2487 = vsyncpa [#allocation4], 1 }

</bundles_post_ra>
